<compile_context>
chip_gen: v6e
topology: v6e:2x2x1
jax: 0.10.0
libtpu: 0.0.40
codegen_flags: <defaults>
</compile_context>

<pallas_src>
import functools
import math

import jax
import jax.numpy as jnp
from jax.experimental import pallas as pl
from jax.experimental.pallas import tpu as pltpu


# ----------------------------------------------------------------------------- helpers
def _layernorm(x, gamma, beta, eps=1e-5):
    # f32 elementwise math (v5e VPU has no bf16).
    mean = jnp.mean(x, axis=-1, keepdims=True)
    var = jnp.mean((x - mean) ** 2, axis=-1, keepdims=True)
    return (x - mean) * jax.lax.rsqrt(var + eps) * gamma + beta


# ----------------------------------------------------------------------------- kernel
def fused_encoder_blocks_kernel(
    x_ref, mask_ref,
    wq_ref, wk_ref, wv_ref, wo_ref,
    bq_ref, bk_ref, bv_ref, bo_ref,
    g1_ref, be1_ref,
    w1_ref, b1_ref, w2_ref, b2_ref,
    g2_ref, be2_ref,
    o_ref,
    act_ref,                      # VMEM scratch (B*S, D) f32: activation carry across blocks
    *, batch, n_heads,
):
    l = pl.program_id(0)          # transformer-block index (sequential, "arbitrary")
    N, D = act_ref.shape
    B = batch
    S = N // B
    H = n_heads
    dh = D // H
    f32 = jnp.float32
    bf16 = jnp.bfloat16

    # Load the embedding input into the carry on the first block only.
    @pl.when(l == 0)
    def _():
        act_ref[...] = x_ref[...].reshape(N, D).astype(f32)

    x = act_ref[...]              # (N, D) f32 residual stream
    x_bf = x.astype(bf16)         # bf16 operand for the MXU

    # --- QKV projections: flat (B*S, D) x (D, D), bf16 operands, f32 accumulate.
    #     1/sqrt(dh) is pre-folded into wq at prep time (no score scaling below).
    q = jnp.dot(x_bf, wq_ref[...], preferred_element_type=f32) + bq_ref[...]
    k = jnp.dot(x_bf, wk_ref[...], preferred_element_type=f32) + bk_ref[...]
    v = jnp.dot(x_bf, wv_ref[...], preferred_element_type=f32) + bv_ref[...]

    # --- head split: (N, D) -> (B, S, H, dh) -> (B, H, S, dh) -> (B*H, S, dh)
    def to_heads(t):
        return (t.reshape(B, S, H, dh)
                 .transpose(0, 2, 1, 3)
                 .reshape(B * H, S, dh)
                 .astype(bf16))

    qh = to_heads(q)
    kh = to_heads(k)
    vh = to_heads(v)

    # --- attention scores over the merged (B*H) batch dim.
    scores = jnp.einsum("gqc,gkc->gqk", qh, kh,
                        preferred_element_type=f32)              # (B*H, S, S) f32

    # Additive key-padding bias built in-kernel from the tiny (B, S) mask.
    bias = jnp.where(mask_ref[...] > 0, 0.0, -1e9)               # (B, S) f32
    scores = scores.reshape(B, H, S, S) + bias[:, None, None, :]
    scores = scores.reshape(B * H, S, S)

    # --- softmax with deferred normalization (normalize ctx, not p).
    m = jnp.max(scores, axis=-1, keepdims=True)
    p = jnp.exp(scores - m)
    denom = jnp.sum(p, axis=-1, keepdims=True)                   # (B*H, S, 1)
    ctx = jnp.einsum("gqk,gkc->gqc", p.astype(bf16), vh,
                     preferred_element_type=f32)                 # (B*H, S, dh)
    ctx = ctx * pl.reciprocal(denom, approx=True)                # EUP slot, ~free

    # --- merge heads back + output projection.
    attn = (ctx.reshape(B, H, S, dh)
               .transpose(0, 2, 1, 3)
               .reshape(N, D))
    attn = jnp.dot(attn.astype(bf16), wo_ref[...],
                   preferred_element_type=f32) + bo_ref[...]

    # --- residual + LayerNorm (post-norm).
    res1 = x + attn
    ln1 = _layernorm(res1, g1_ref[...], be1_ref[...])

    # --- FFN (ReLU, 4x).
    hid = jnp.dot(ln1.astype(bf16), w1_ref[...],
                  preferred_element_type=f32) + b1_ref[...]
    hid = jnp.maximum(hid, 0.0)
    ff = jnp.dot(hid.astype(bf16), w2_ref[...],
                 preferred_element_type=f32) + b2_ref[...]

    res2 = ln1 + ff
    out = _layernorm(res2, g2_ref[...], be2_ref[...])

    # Carry to the next block; the (tiny) output write each step is negligible and the
    # final grid step's value is what lands in HBM.
    act_ref[...] = out
    o_ref[...] = out.reshape(B, S, D).astype(o_ref.dtype)


# ----------------------------------------------------------------------------- wrapper
_WEIGHT_ORDER = ("wq", "wk", "wv", "wo", "bq", "bk", "bv", "bo",
                 "g1", "be1", "w1", "b1", "w2", "b2", "g2", "be2")


def pallas_encoder_blocks(x, key_mask, stacked, *, n_heads):
    """Runs ALL transformer blocks in a single pallas_call (grid over blocks)."""
    B, S, D = x.shape
    L = stacked["wq"].shape[0]
    N = B * S

    def stacked_spec(arr):
        a1, a2 = arr.shape[1], arr.shape[2]
        # One block's slice per grid step; leading block dim squeezed in the kernel.
        return pl.BlockSpec((None, a1, a2), lambda l: (l, 0, 0))

    def const_spec(arr):
        nd = arr.ndim
        return pl.BlockSpec(arr.shape, lambda l, nd=nd: (0,) * nd)

    args = [x, key_mask] + [stacked[name] for name in _WEIGHT_ORDER]
    in_specs = [const_spec(x), const_spec(key_mask)]
    in_specs += [stacked_spec(stacked[name]) for name in _WEIGHT_ORDER]

    kernel = functools.partial(fused_encoder_blocks_kernel, batch=B, n_heads=n_heads)
    return pl.pallas_call(
        kernel,
        out_shape=jax.ShapeDtypeStruct((B, S, D), x.dtype),
        grid=(L,),
        in_specs=in_specs,
        out_specs=pl.BlockSpec((B, S, D), lambda l: (0, 0, 0)),
        scratch_shapes=[pltpu.VMEM((N, D), jnp.float32)],
        compiler_params=pltpu.CompilerParams(
            dimension_semantics=("arbitrary",),   # sequential dependency across blocks
            # no vmem_limit_bytes: footprint is tiny; never request all of v7x's 64 MiB
        ),
    )(*args)


# ----------------------------------------------------------------------------- params
def init_encoder_params(key, emb_dim, n_heads, n_blocks, max_seq_length, vocab_size):
    dff = 4 * emb_dim
    keys = jax.random.split(key, 2 + n_blocks)
    params = {
        "word_emb": 0.02 * jax.random.normal(keys[0], (vocab_size, emb_dim), jnp.float32),
        "pos_emb": 0.02 * jax.random.normal(keys[1], (max_seq_length, emb_dim), jnp.float32),
        "blocks": [],
    }
    for i in range(n_blocks):
        bk = jax.random.split(keys[2 + i], 6)
        blk = {
            "wq": 0.05 * jax.random.normal(bk[0], (emb_dim, emb_dim), jnp.float32),
            "wk": 0.05 * jax.random.normal(bk[1], (emb_dim, emb_dim), jnp.float32),
            "wv": 0.05 * jax.random.normal(bk[2], (emb_dim, emb_dim), jnp.float32),
            "wo": 0.05 * jax.random.normal(bk[3], (emb_dim, emb_dim), jnp.float32),
            "bq": jnp.zeros((1, emb_dim), jnp.float32),
            "bk": jnp.zeros((1, emb_dim), jnp.float32),
            "bv": jnp.zeros((1, emb_dim), jnp.float32),
            "bo": jnp.zeros((1, emb_dim), jnp.float32),
            "g1": jnp.ones((1, emb_dim), jnp.float32),
            "be1": jnp.zeros((1, emb_dim), jnp.float32),
            "w1": 0.05 * jax.random.normal(bk[4], (emb_dim, dff), jnp.float32),
            "b1": jnp.zeros((1, dff), jnp.float32),
            "w2": 0.05 * jax.random.normal(bk[5], (dff, emb_dim), jnp.float32),
            "b2": jnp.zeros((1, emb_dim), jnp.float32),
            "g2": jnp.ones((1, emb_dim), jnp.float32),
            "be2": jnp.zeros((1, emb_dim), jnp.float32),
        }
        params["blocks"].append(blk)
    return params


def prepare_params(params, n_heads):
    """One-time weight prep: stack per-block tensors over a leading n_blocks axis,
    cast matmul weights to bf16 ONCE, and fold 1/sqrt(dh) into Wq."""
    blocks = params["blocks"]
    emb_dim = params["word_emb"].shape[1]
    dh = emb_dim // n_heads
    scale = 1.0 / math.sqrt(dh)
    bf16 = jnp.bfloat16

    def stack(name):
        return jnp.stack([blk[name] for blk in blocks], axis=0)

    stacked = {
        "wq": (stack("wq") * scale).astype(bf16),   # scale folded into Wq
        "wk": stack("wk").astype(bf16),
        "wv": stack("wv").astype(bf16),
        "wo": stack("wo").astype(bf16),
        "w1": stack("w1").astype(bf16),
        "w2": stack("w2").astype(bf16),
    }
    for name in ("bq", "bk", "bv", "bo", "g1", "be1", "b1", "b2", "g2", "be2"):
        stacked[name] = stack(name)                 # biases / LN params stay f32
    return {
        "word_emb": params["word_emb"],
        "pos_emb": params["pos_emb"],
        "blocks": stacked,
    }


# ----------------------------------------------------------------------------- encoder
def encoder_forward(prepared, X, src_mask, *, n_heads):
    # X: (B, S) int32 token ids; src_mask: (B, S) key-padding validity mask {1, 0}.
    B, S = X.shape
    word = jnp.take(prepared["word_emb"], X, axis=0)      # gather: glue left to XLA
    pos = prepared["pos_emb"][:S]                         # (S, D)
    emb = (word + pos[None, :, :]).astype(jnp.float32)    # fused by XLA under jit
    return pallas_encoder_blocks(emb, src_mask.astype(jnp.float32),
                                 prepared["blocks"], n_heads=n_heads)


# ----------------------------------------------------------------------------- main
if __name__ == "__main__":
    emb_dim = 128          # lane-dense last dim (multiple of 128)
    n_heads = 4            # dh = 32
    n_blocks = 2
    max_seq_length = 16
    vocab_size = 50
    B, S = 2, 8

    key = jax.random.PRNGKey(0)
    kp, kx = jax.random.split(key)
    params = init_encoder_params(kp, emb_dim, n_heads, n_blocks, max_seq_length, vocab_size)
    prepared = prepare_params(params, n_heads)     # one-time bf16 cast / stack / scale-fold

    X = jax.random.randint(kx, (B, S), 0, vocab_size, dtype=jnp.int32)
    # src padding mask: batch 0 has full length 8, batch 1 has length 6 (last 2 keys masked)
    lengths = jnp.array([8, 6], dtype=jnp.int32)
    src_mask = (jnp.arange(S)[None, :] < lengths[:, None]).astype(jnp.float32)   # (B, S)

    fwd = jax.jit(functools.partial(encoder_forward, n_heads=n_heads))
    out = fwd(prepared, X, src_mask)
    out = jax.block_until_ready(out)
    assert out.shape == (B, S, emb_dim)
    assert bool(jnp.all(jnp.isfinite(out)))
    print("KERNEL_OK")
</pallas_src>

<mosaic_0001>
module attributes {stable_mosaic.version = 11 : i64} {
  func.func @fused_encoder_blocks_kernel(%arg0: i32, %arg1: memref<2x8x128xf32, #tpu.memory_space<vmem>>, %arg2: memref<2x8xf32, #tpu.memory_space<vmem>>, %arg3: memref<1x128x128xbf16, #tpu.memory_space<vmem>>, %arg4: memref<1x128x128xbf16, #tpu.memory_space<vmem>>, %arg5: memref<1x128x128xbf16, #tpu.memory_space<vmem>>, %arg6: memref<1x128x128xbf16, #tpu.memory_space<vmem>>, %arg7: memref<1x1x128xf32, #tpu.memory_space<vmem>>, %arg8: memref<1x1x128xf32, #tpu.memory_space<vmem>>, %arg9: memref<1x1x128xf32, #tpu.memory_space<vmem>>, %arg10: memref<1x1x128xf32, #tpu.memory_space<vmem>>, %arg11: memref<1x1x128xf32, #tpu.memory_space<vmem>>, %arg12: memref<1x1x128xf32, #tpu.memory_space<vmem>>, %arg13: memref<1x128x512xbf16, #tpu.memory_space<vmem>>, %arg14: memref<1x1x512xf32, #tpu.memory_space<vmem>>, %arg15: memref<1x512x128xbf16, #tpu.memory_space<vmem>>, %arg16: memref<1x1x128xf32, #tpu.memory_space<vmem>>, %arg17: memref<1x1x128xf32, #tpu.memory_space<vmem>>, %arg18: memref<1x1x128xf32, #tpu.memory_space<vmem>>, %arg19: memref<2x8x128xf32, #tpu.memory_space<vmem>>, %arg20: memref<16x128xf32, #tpu.memory_space<vmem>>) attributes {dimension_semantics = [#tpu.dimension_semantics<arbitrary>], iteration_bounds = array<i64: 2>, scalar_prefetch = 0 : i64, scratch_operands = 1 : i64, tpu.core_type = #tpu.core_type<tc>, window_params = [{pipeline_mode = #tpu.pipeline_mode<synchronous>, transform_indices = @transform_0, window_bounds = array<i64: 2, 8, 128>}, {pipeline_mode = #tpu.pipeline_mode<synchronous>, transform_indices = @transform_1, window_bounds = array<i64: 2, 8>}, {transform_indices = @transform_2, window_bounds = array<i64: 1, 128, 128>}, {transform_indices = @transform_3, window_bounds = array<i64: 1, 128, 128>}, {transform_indices = @transform_4, window_bounds = array<i64: 1, 128, 128>}, {transform_indices = @transform_5, window_bounds = array<i64: 1, 128, 128>}, {transform_indices = @transform_6, window_bounds = array<i64: 1, 1, 128>}, {transform_indices = @transform_7, window_bounds = array<i64: 1, 1, 128>}, {transform_indices = @transform_8, window_bounds = array<i64: 1, 1, 128>}, {transform_indices = @transform_9, window_bounds = array<i64: 1, 1, 128>}, {transform_indices = @transform_10, window_bounds = array<i64: 1, 1, 128>}, {transform_indices = @transform_11, window_bounds = array<i64: 1, 1, 128>}, {transform_indices = @transform_12, window_bounds = array<i64: 1, 128, 512>}, {transform_indices = @transform_13, window_bounds = array<i64: 1, 1, 512>}, {transform_indices = @transform_14, window_bounds = array<i64: 1, 512, 128>}, {transform_indices = @transform_15, window_bounds = array<i64: 1, 1, 128>}, {transform_indices = @transform_16, window_bounds = array<i64: 1, 1, 128>}, {transform_indices = @transform_17, window_bounds = array<i64: 1, 1, 128>}, {pipeline_mode = #tpu.pipeline_mode<synchronous>, transform_indices = @transform_18, window_bounds = array<i64: 2, 8, 128>}]} {
    %c0_i32 = arith.constant 0 : i32
    %0 = arith.cmpi eq, %arg0, %c0_i32 : i32
    %1 = arith.extui %0 : i1 to i32
    %c0_i32_0 = arith.constant 0 : i32
    %2 = arith.cmpi ne, %1, %c0_i32_0 : i32
    scf.if %2 {
      %c0_80 = arith.constant 0 : index
      %c0_81 = arith.constant 0 : index
      %c0_82 = arith.constant 0 : index
      %148 = vector.load %arg1[%c0_80, %c0_81, %c0_82] : memref<2x8x128xf32, #tpu.memory_space<vmem>>, vector<2x8x128xf32>
      %149 = vector.shape_cast %148 : vector<2x8x128xf32> to vector<16x128xf32>
      %c0_83 = arith.constant 0 : index
      %c0_84 = arith.constant 0 : index
      %150 = vector.load %arg20[%c0_83, %c0_84] : memref<16x128xf32, #tpu.memory_space<vmem>>, vector<16x128xf32>
      tpu.vector_store %arg20[%c0_83, %c0_84], %149 {strides = array<i32>} : memref<16x128xf32, #tpu.memory_space<vmem>>, vector<16x128xf32>,
    } else {
    }
    %c0 = arith.constant 0 : index
    %c0_1 = arith.constant 0 : index
    %3 = vector.load %arg20[%c0, %c0_1] : memref<16x128xf32, #tpu.memory_space<vmem>>, vector<16x128xf32>
    %4 = arith.truncf %3 : vector<16x128xf32> to vector<16x128xbf16>
    %c0_2 = arith.constant 0 : index
    %c0_3 = arith.constant 0 : index
    %c0_4 = arith.constant 0 : index
    %5 = vector.load %arg3[%c0_2, %c0_3, %c0_4] : memref<1x128x128xbf16, #tpu.memory_space<vmem>>, vector<1x128x128xbf16>
    %6 = vector.shape_cast %5 : vector<1x128x128xbf16> to vector<128x128xbf16>
    %cst = arith.constant dense<0.000000e+00> : vector<16x128xf32>
    %7 = tpu.matmul %4, %6, %cst {dimension_numbers = #tpu.dot_dimension_numbers<[1], [0], [0], [1], [0, 0, 1, 1], [], []>} : vector<16x128xbf16>, vector<128x128xbf16>, vector<16x128xf32> -> vector<16x128xf32>
    %c0_5 = arith.constant 0 : index
    %c0_6 = arith.constant 0 : index
    %c0_7 = arith.constant 0 : index
    %8 = vector.load %arg7[%c0_5, %c0_6, %c0_7] : memref<1x1x128xf32, #tpu.memory_space<vmem>>, vector<1x1x128xf32>
    %9 = vector.shape_cast %8 : vector<1x1x128xf32> to vector<1x128xf32>
    %10 = vector.broadcast %9 : vector<1x128xf32> to vector<16x128xf32>
    %11 = arith.addf %7, %10 : vector<16x128xf32>
    %c0_8 = arith.constant 0 : index
    %c0_9 = arith.constant 0 : index
    %c0_10 = arith.constant 0 : index
    %12 = vector.load %arg4[%c0_8, %c0_9, %c0_10] : memref<1x128x128xbf16, #tpu.memory_space<vmem>>, vector<1x128x128xbf16>
    %13 = vector.shape_cast %12 : vector<1x128x128xbf16> to vector<128x128xbf16>
    %cst_11 = arith.constant dense<0.000000e+00> : vector<16x128xf32>
    %14 = tpu.matmul %4, %13, %cst_11 {dimension_numbers = #tpu.dot_dimension_numbers<[1], [0], [0], [1], [0, 0, 1, 1], [], []>} : vector<16x128xbf16>, vector<128x128xbf16>, vector<16x128xf32> -> vector<16x128xf32>
    %c0_12 = arith.constant 0 : index
    %c0_13 = arith.constant 0 : index
    %c0_14 = arith.constant 0 : index
    %15 = vector.load %arg8[%c0_12, %c0_13, %c0_14] : memref<1x1x128xf32, #tpu.memory_space<vmem>>, vector<1x1x128xf32>
    %16 = vector.shape_cast %15 : vector<1x1x128xf32> to vector<1x128xf32>
    %17 = vector.broadcast %16 : vector<1x128xf32> to vector<16x128xf32>
    %18 = arith.addf %14, %17 : vector<16x128xf32>
    %c0_15 = arith.constant 0 : index
    %c0_16 = arith.constant 0 : index
    %c0_17 = arith.constant 0 : index
    %19 = vector.load %arg5[%c0_15, %c0_16, %c0_17] : memref<1x128x128xbf16, #tpu.memory_space<vmem>>, vector<1x128x128xbf16>
    %20 = vector.shape_cast %19 : vector<1x128x128xbf16> to vector<128x128xbf16>
    %cst_18 = arith.constant dense<0.000000e+00> : vector<16x128xf32>
    %21 = tpu.matmul %4, %20, %cst_18 {dimension_numbers = #tpu.dot_dimension_numbers<[1], [0], [0], [1], [0, 0, 1, 1], [], []>} : vector<16x128xbf16>, vector<128x128xbf16>, vector<16x128xf32> -> vector<16x128xf32>
    %c0_19 = arith.constant 0 : index
    %c0_20 = arith.constant 0 : index
    %c0_21 = arith.constant 0 : index
    %22 = vector.load %arg9[%c0_19, %c0_20, %c0_21] : memref<1x1x128xf32, #tpu.memory_space<vmem>>, vector<1x1x128xf32>
    %23 = vector.shape_cast %22 : vector<1x1x128xf32> to vector<1x128xf32>
    %24 = vector.broadcast %23 : vector<1x128xf32> to vector<16x128xf32>
    %25 = arith.addf %21, %24 : vector<16x128xf32>
    %26 = vector.shape_cast %11 : vector<16x128xf32> to vector<2x8x4x32xf32>
    %27 = tpu.transpose %26, [0, 2, 1, 3] : vector<2x8x4x32xf32> -> vector<2x4x8x32xf32>
    %28 = vector.shape_cast %27 : vector<2x4x8x32xf32> to vector<8x8x32xf32>
    %29 = arith.truncf %28 : vector<8x8x32xf32> to vector<8x8x32xbf16>
    %30 = vector.shape_cast %18 : vector<16x128xf32> to vector<2x8x4x32xf32>
    %31 = tpu.transpose %30, [0, 2, 1, 3] : vector<2x8x4x32xf32> -> vector<2x4x8x32xf32>
    %32 = vector.shape_cast %31 : vector<2x4x8x32xf32> to vector<8x8x32xf32>
    %33 = arith.truncf %32 : vector<8x8x32xf32> to vector<8x8x32xbf16>
    %34 = vector.shape_cast %25 : vector<16x128xf32> to vector<2x8x4x32xf32>
    %35 = tpu.transpose %34, [0, 2, 1, 3] : vector<2x8x4x32xf32> -> vector<2x4x8x32xf32>
    %36 = vector.shape_cast %35 : vector<2x4x8x32xf32> to vector<8x8x32xf32>
    %37 = arith.truncf %36 : vector<8x8x32xf32> to vector<8x8x32xbf16>
    "tpu.trace_start"() <{level = 10 : i32, message = "gqc,gkc->gqk"}> : () -> ()
    %cst_22 = arith.constant dense<0.000000e+00> : vector<8x8x8xf32>
    %38 = tpu.matmul %29, %33, %cst_22 {dimension_numbers = #tpu.dot_dimension_numbers<[2], [2], [1], [1], [0, 0, 0, 1, 1, 1], [0], [0]>} : vector<8x8x32xbf16>, vector<8x8x32xbf16>, vector<8x8x8xf32> -> vector<8x8x8xf32>
    "tpu.trace_stop"() : () -> ()
    %c0_23 = arith.constant 0 : index
    %c0_24 = arith.constant 0 : index
    %39 = vector.load %arg2[%c0_23, %c0_24] : memref<2x8xf32, #tpu.memory_space<vmem>>, vector<2x8xf32>
    %cst_25 = arith.constant 0.000000e+00 : f32
    %40 = vector.broadcast %cst_25 : f32 to vector<2x8xf32>
    %41 = arith.cmpf ogt, %39, %40 : vector<2x8xf32>
    %cst_26 = arith.constant 0.000000e+00 : f32
    %cst_27 = arith.constant -1.000000e+09 : f32
    %42 = vector.broadcast %cst_26 : f32 to vector<2x8xf32>
    %43 = vector.broadcast %cst_27 : f32 to vector<2x8xf32>
    %44 = arith.select %41, %42, %43 : vector<2x8xi1>, vector<2x8xf32>
    %45 = vector.shape_cast %38 : vector<8x8x8xf32> to vector<2x4x8x8xf32>
    %46 = vector.shape_cast %44 : vector<2x8xf32> to vector<2x1x1x8xf32>
    %47 = vector.broadcast %46 : vector<2x1x1x8xf32> to vector<2x4x8x8xf32>
    %48 = arith.addf %45, %47 : vector<2x4x8x8xf32>
    %49 = vector.shape_cast %48 : vector<2x4x8x8xf32> to vector<8x8x8xf32>
    %cst_28 = arith.constant dense<0xFF800000> : vector<8x8xf32>
    %50 = vector.multi_reduction <maximumf>, %49, %cst_28 [2] : vector<8x8x8xf32> to vector<8x8xf32>
    %51 = vector.shape_cast %50 : vector<8x8xf32> to vector<8x8x1xf32>
    %52 = vector.broadcast %51 : vector<8x8x1xf32> to vector<8x8x8xf32>
    %53 = arith.subf %49, %52 : vector<8x8x8xf32>
    %54 = math.exp %53 : vector<8x8x8xf32>
    %cst_29 = arith.constant dense<0.000000e+00> : vector<8x8xf32>
    %55 = vector.multi_reduction <add>, %54, %cst_29 [2] : vector<8x8x8xf32> to vector<8x8xf32>
    %56 = vector.shape_cast %55 : vector<8x8xf32> to vector<8x8x1xf32>
    %57 = arith.truncf %54 : vector<8x8x8xf32> to vector<8x8x8xbf16>
    "tpu.trace_start"() <{level = 10 : i32, message = "gqk,gkc->gqc"}> : () -> ()
    %cst_30 = arith.constant dense<0.000000e+00> : vector<8x8x32xf32>
    %58 = tpu.matmul %57, %37, %cst_30 {dimension_numbers = #tpu.dot_dimension_numbers<[2], [1], [1], [2], [0, 0, 0, 1, 1, 2], [0], [0]>} : vector<8x8x8xbf16>, vector<8x8x32xbf16>, vector<8x8x32xf32> -> vector<8x8x32xf32>
    "tpu.trace_stop"() : () -> ()
    %59 = tpu.reciprocal %56 {approx = true} : vector<8x8x1xf32> -> vector<8x8x1xf32>
    %60 = vector.broadcast %59 : vector<8x8x1xf32> to vector<8x8x32xf32>
    %61 = arith.mulf %58, %60 : vector<8x8x32xf32>
    %62 = vector.shape_cast %61 : vector<8x8x32xf32> to vector<2x4x8x32xf32>
    %63 = tpu.transpose %62, [0, 2, 1, 3] : vector<2x4x8x32xf32> -> vector<2x8x4x32xf32>
    %64 = vector.shape_cast %63 : vector<2x8x4x32xf32> to vector<16x128xf32>
    %65 = arith.truncf %64 : vector<16x128xf32> to vector<16x128xbf16>
    %c0_31 = arith.constant 0 : index
    %c0_32 = arith.constant 0 : index
    %c0_33 = arith.constant 0 : index
    %66 = vector.load %arg6[%c0_31, %c0_32, %c0_33] : memref<1x128x128xbf16, #tpu.memory_space<vmem>>, vector<1x128x128xbf16>
    %67 = vector.shape_cast %66 : vector<1x128x128xbf16> to vector<128x128xbf16>
    %cst_34 = arith.constant dense<0.000000e+00> : vector<16x128xf32>
    %68 = tpu.matmul %65, %67, %cst_34 {dimension_numbers = #tpu.dot_dimension_numbers<[1], [0], [0], [1], [0, 0, 1, 1], [], []>} : vector<16x128xbf16>, vector<128x128xbf16>, vector<16x128xf32> -> vector<16x128xf32>
    %c0_35 = arith.constant 0 : index
    %c0_36 = arith.constant 0 : index
    %c0_37 = arith.constant 0 : index
    %69 = vector.load %arg10[%c0_35, %c0_36, %c0_37] : memref<1x1x128xf32, #tpu.memory_space<vmem>>, vector<1x1x128xf32>
    %70 = vector.shape_cast %69 : vector<1x1x128xf32> to vector<1x128xf32>
    %71 = vector.broadcast %70 : vector<1x128xf32> to vector<16x128xf32>
    %72 = arith.addf %68, %71 : vector<16x128xf32>
    %73 = arith.addf %3, %72 : vector<16x128xf32>
    %c0_38 = arith.constant 0 : index
    %c0_39 = arith.constant 0 : index
    %c0_40 = arith.constant 0 : index
    %74 = vector.load %arg11[%c0_38, %c0_39, %c0_40] : memref<1x1x128xf32, #tpu.memory_space<vmem>>, vector<1x1x128xf32>
    %75 = vector.shape_cast %74 : vector<1x1x128xf32> to vector<1x128xf32>
    %c0_41 = arith.constant 0 : index
    %c0_42 = arith.constant 0 : index
    %c0_43 = arith.constant 0 : index
    %76 = vector.load %arg12[%c0_41, %c0_42, %c0_43] : memref<1x1x128xf32, #tpu.memory_space<vmem>>, vector<1x1x128xf32>
    %77 = vector.shape_cast %76 : vector<1x1x128xf32> to vector<1x128xf32>
    %cst_44 = arith.constant dense<0.000000e+00> : vector<16xf32>
    %78 = vector.multi_reduction <add>, %73, %cst_44 [1] : vector<16x128xf32> to vector<16xf32>
    %79 = vector.shape_cast %78 : vector<16xf32> to vector<16x1xf32>
    %cst_45 = arith.constant 1.280000e+02 : f32
    %80 = vector.broadcast %cst_45 : f32 to vector<16x1xf32>
    %81 = arith.divf %79, %80 : vector<16x1xf32>
    %82 = vector.broadcast %81 : vector<16x1xf32> to vector<16x128xf32>
    %83 = arith.subf %73, %82 : vector<16x128xf32>
    %84 = arith.mulf %83, %83 : vector<16x128xf32>
    %cst_46 = arith.constant dense<0.000000e+00> : vector<16xf32>
    %85 = vector.multi_reduction <add>, %84, %cst_46 [1] : vector<16x128xf32> to vector<16xf32>
    %86 = vector.shape_cast %85 : vector<16xf32> to vector<16x1xf32>
    %cst_47 = arith.constant 1.280000e+02 : f32
    %87 = vector.broadcast %cst_47 : f32 to vector<16x1xf32>
    %88 = arith.divf %86, %87 : vector<16x1xf32>
    %89 = vector.broadcast %81 : vector<16x1xf32> to vector<16x128xf32>
    %90 = arith.subf %73, %89 : vector<16x128xf32>
    %cst_48 = arith.constant 9.99999974E-6 : f32
    %91 = vector.broadcast %cst_48 : f32 to vector<16x1xf32>
    %92 = arith.addf %88, %91 : vector<16x1xf32>
    %93 = math.rsqrt %92 : vector<16x1xf32>
    %94 = vector.broadcast %93 : vector<16x1xf32> to vector<16x128xf32>
    %95 = arith.mulf %90, %94 : vector<16x128xf32>
    %96 = vector.broadcast %75 : vector<1x128xf32> to vector<16x128xf32>
    %97 = arith.mulf %95, %96 : vector<16x128xf32>
    %98 = vector.broadcast %77 : vector<1x128xf32> to vector<16x128xf32>
    %99 = arith.addf %97, %98 : vector<16x128xf32>
    %100 = arith.truncf %99 : vector<16x128xf32> to vector<16x128xbf16>
    %c0_49 = arith.constant 0 : index
    %c0_50 = arith.constant 0 : index
    %c0_51 = arith.constant 0 : index
    %101 = vector.load %arg13[%c0_49, %c0_50, %c0_51] : memref<1x128x512xbf16, #tpu.memory_space<vmem>>, vector<1x128x512xbf16>
    %102 = vector.shape_cast %101 : vector<1x128x512xbf16> to vector<128x512xbf16>
    %cst_52 = arith.constant dense<0.000000e+00> : vector<16x512xf32>
    %103 = tpu.matmul %100, %102, %cst_52 {dimension_numbers = #tpu.dot_dimension_numbers<[1], [0], [0], [1], [0, 0, 1, 1], [], []>} : vector<16x128xbf16>, vector<128x512xbf16>, vector<16x512xf32> -> vector<16x512xf32>
    %c0_53 = arith.constant 0 : index
    %c0_54 = arith.constant 0 : index
    %c0_55 = arith.constant 0 : index
    %104 = vector.load %arg14[%c0_53, %c0_54, %c0_55] : memref<1x1x512xf32, #tpu.memory_space<vmem>>, vector<1x1x512xf32>
    %105 = vector.shape_cast %104 : vector<1x1x512xf32> to vector<1x512xf32>
    %106 = vector.broadcast %105 : vector<1x512xf32> to vector<16x512xf32>
    %107 = arith.addf %103, %106 : vector<16x512xf32>
    %cst_56 = arith.constant 0.000000e+00 : f32
    %108 = vector.broadcast %cst_56 : f32 to vector<16x512xf32>
    %109 = arith.maximumf %107, %108 : vector<16x512xf32>
    %110 = arith.truncf %109 : vector<16x512xf32> to vector<16x512xbf16>
    %c0_57 = arith.constant 0 : index
    %c0_58 = arith.constant 0 : index
    %c0_59 = arith.constant 0 : index
    %111 = vector.load %arg15[%c0_57, %c0_58, %c0_59] : memref<1x512x128xbf16, #tpu.memory_space<vmem>>, vector<1x512x128xbf16>
    %112 = vector.shape_cast %111 : vector<1x512x128xbf16> to vector<512x128xbf16>
    %cst_60 = arith.constant dense<0.000000e+00> : vector<16x128xf32>
    %113 = tpu.matmul %110, %112, %cst_60 {dimension_numbers = #tpu.dot_dimension_numbers<[1], [0], [0], [1], [0, 0, 1, 1], [], []>} : vector<16x512xbf16>, vector<512x128xbf16>, vector<16x128xf32> -> vector<16x128xf32>
    %c0_61 = arith.constant 0 : index
    %c0_62 = arith.constant 0 : index
    %c0_63 = arith.constant 0 : index
    %114 = vector.load %arg16[%c0_61, %c0_62, %c0_63] : memref<1x1x128xf32, #tpu.memory_space<vmem>>, vector<1x1x128xf32>
    %115 = vector.shape_cast %114 : vector<1x1x128xf32> to vector<1x128xf32>
    %116 = vector.broadcast %115 : vector<1x128xf32> to vector<16x128xf32>
    %117 = arith.addf %113, %116 : vector<16x128xf32>
    %118 = arith.addf %99, %117 : vector<16x128xf32>
    %c0_64 = arith.constant 0 : index
    %c0_65 = arith.constant 0 : index
    %c0_66 = arith.constant 0 : index
    %119 = vector.load %arg17[%c0_64, %c0_65, %c0_66] : memref<1x1x128xf32, #tpu.memory_space<vmem>>, vector<1x1x128xf32>
    %120 = vector.shape_cast %119 : vector<1x1x128xf32> to vector<1x128xf32>
    %c0_67 = arith.constant 0 : index
    %c0_68 = arith.constant 0 : index
    %c0_69 = arith.constant 0 : index
    %121 = vector.load %arg18[%c0_67, %c0_68, %c0_69] : memref<1x1x128xf32, #tpu.memory_space<vmem>>, vector<1x1x128xf32>
    %122 = vector.shape_cast %121 : vector<1x1x128xf32> to vector<1x128xf32>
    %cst_70 = arith.constant dense<0.000000e+00> : vector<16xf32>
    %123 = vector.multi_reduction <add>, %118, %cst_70 [1] : vector<16x128xf32> to vector<16xf32>
    %124 = vector.shape_cast %123 : vector<16xf32> to vector<16x1xf32>
    %cst_71 = arith.constant 1.280000e+02 : f32
    %125 = vector.broadcast %cst_71 : f32 to vector<16x1xf32>
    %126 = arith.divf %124, %125 : vector<16x1xf32>
    %127 = vector.broadcast %126 : vector<16x1xf32> to vector<16x128xf32>
    %128 = arith.subf %118, %127 : vector<16x128xf32>
    %129 = arith.mulf %128, %128 : vector<16x128xf32>
    %cst_72 = arith.constant dense<0.000000e+00> : vector<16xf32>
    %130 = vector.multi_reduction <add>, %129, %cst_72 [1] : vector<16x128xf32> to vector<16xf32>
    %131 = vector.shape_cast %130 : vector<16xf32> to vector<16x1xf32>
    %cst_73 = arith.constant 1.280000e+02 : f32
    %132 = vector.broadcast %cst_73 : f32 to vector<16x1xf32>
    %133 = arith.divf %131, %132 : vector<16x1xf32>
    %134 = vector.broadcast %126 : vector<16x1xf32> to vector<16x128xf32>
    %135 = arith.subf %118, %134 : vector<16x128xf32>
    %cst_74 = arith.constant 9.99999974E-6 : f32
    %136 = vector.broadcast %cst_74 : f32 to vector<16x1xf32>
    %137 = arith.addf %133, %136 : vector<16x1xf32>
    %138 = math.rsqrt %137 : vector<16x1xf32>
    %139 = vector.broadcast %138 : vector<16x1xf32> to vector<16x128xf32>
    %140 = arith.mulf %135, %139 : vector<16x128xf32>
    %141 = vector.broadcast %120 : vector<1x128xf32> to vector<16x128xf32>
    %142 = arith.mulf %140, %141 : vector<16x128xf32>
    %143 = vector.broadcast %122 : vector<1x128xf32> to vector<16x128xf32>
    %144 = arith.addf %142, %143 : vector<16x128xf32>
    %c0_75 = arith.constant 0 : index
    %c0_76 = arith.constant 0 : index
    %145 = vector.load %arg20[%c0_75, %c0_76] : memref<16x128xf32, #tpu.memory_space<vmem>>, vector<16x128xf32>
    tpu.vector_store %arg20[%c0_75, %c0_76], %144 {strides = array<i32>} : memref<16x128xf32, #tpu.memory_space<vmem>>, vector<16x128xf32>,
    %146 = vector.shape_cast %144 : vector<16x128xf32> to vector<2x8x128xf32>
    %c0_77 = arith.constant 0 : index
    %c0_78 = arith.constant 0 : index
    %c0_79 = arith.constant 0 : index
    %147 = vector.load %arg19[%c0_77, %c0_78, %c0_79] : memref<2x8x128xf32, #tpu.memory_space<vmem>>, vector<2x8x128xf32>
    tpu.vector_store %arg19[%c0_77, %c0_78, %c0_79], %146 {strides = array<i32>} : memref<2x8x128xf32, #tpu.memory_space<vmem>>, vector<2x8x128xf32>,
    return
  }
  func.func @transform_0(%arg0: i32) -> (i32, i32, i32) {
    %c0_i32 = arith.constant 0 : i32
    %c0_i32_0 = arith.constant 0 : i32
    %c0_i32_1 = arith.constant 0 : i32
    %c0_i32_2 = arith.constant 0 : i32
    return %c0_i32, %c0_i32_0, %c0_i32_1 : i32, i32, i32
  }
  func.func @transform_1(%arg0: i32) -> (i32, i32) {
    %c0_i32 = arith.constant 0 : i32
    %c0_i32_0 = arith.constant 0 : i32
    %c0_i32_1 = arith.constant 0 : i32
    return %c0_i32, %c0_i32_0 : i32, i32
  }
  func.func @transform_2(%arg0: i32) -> (i32, i32, i32) {
    %c0_i32 = arith.constant 0 : i32
    %c0_i32_0 = arith.constant 0 : i32
    %c0_i32_1 = arith.constant 0 : i32
    return %arg0, %c0_i32, %c0_i32_0 : i32, i32, i32
  }
  func.func @transform_3(%arg0: i32) -> (i32, i32, i32) {
    %c0_i32 = arith.constant 0 : i32
    %c0_i32_0 = arith.constant 0 : i32
    %c0_i32_1 = arith.constant 0 : i32
    return %arg0, %c0_i32, %c0_i32_0 : i32, i32, i32
  }
  func.func @transform_4(%arg0: i32) -> (i32, i32, i32) {
    %c0_i32 = arith.constant 0 : i32
    %c0_i32_0 = arith.constant 0 : i32
    %c0_i32_1 = arith.constant 0 : i32
    return %arg0, %c0_i32, %c0_i32_0 : i32, i32, i32
  }
  func.func @transform_5(%arg0: i32) -> (i32, i32, i32) {
    %c0_i32 = arith.constant 0 : i32
    %c0_i32_0 = arith.constant 0 : i32
    %c0_i32_1 = arith.constant 0 : i32
    return %arg0, %c0_i32, %c0_i32_0 : i32, i32, i32
  }
  func.func @transform_6(%arg0: i32) -> (i32, i32, i32) {
    %c0_i32 = arith.constant 0 : i32
    %c0_i32_0 = arith.constant 0 : i32
    %c0_i32_1 = arith.constant 0 : i32
    return %arg0, %c0_i32, %c0_i32_0 : i32, i32, i32
  }
  func.func @transform_7(%arg0: i32) -> (i32, i32, i32) {
    %c0_i32 = arith.constant 0 : i32
    %c0_i32_0 = arith.constant 0 : i32
    %c0_i32_1 = arith.constant 0 : i32
    return %arg0, %c0_i32, %c0_i32_0 : i32, i32, i32
  }
  func.func @transform_8(%arg0: i32) -> (i32, i32, i32) {
    %c0_i32 = arith.constant 0 : i32
    %c0_i32_0 = arith.constant 0 : i32
    %c0_i32_1 = arith.constant 0 : i32
    return %arg0, %c0_i32, %c0_i32_0 : i32, i32, i32
  }
  func.func @transform_9(%arg0: i32) -> (i32, i32, i32) {
    %c0_i32 = arith.constant 0 : i32
    %c0_i32_0 = arith.constant 0 : i32
    %c0_i32_1 = arith.constant 0 : i32
    return %arg0, %c0_i32, %c0_i32_0 : i32, i32, i32
  }
  func.func @transform_10(%arg0: i32) -> (i32, i32, i32) {
    %c0_i32 = arith.constant 0 : i32
    %c0_i32_0 = arith.constant 0 : i32
    %c0_i32_1 = arith.constant 0 : i32
    return %arg0, %c0_i32, %c0_i32_0 : i32, i32, i32
  }
  func.func @transform_11(%arg0: i32) -> (i32, i32, i32) {
    %c0_i32 = arith.constant 0 : i32
    %c0_i32_0 = arith.constant 0 : i32
    %c0_i32_1 = arith.constant 0 : i32
    return %arg0, %c0_i32, %c0_i32_0 : i32, i32, i32
  }
  func.func @transform_12(%arg0: i32) -> (i32, i32, i32) {
    %c0_i32 = arith.constant 0 : i32
    %c0_i32_0 = arith.constant 0 : i32
    %c0_i32_1 = arith.constant 0 : i32
    return %arg0, %c0_i32, %c0_i32_0 : i32, i32, i32
  }
  func.func @transform_13(%arg0: i32) -> (i32, i32, i32) {
    %c0_i32 = arith.constant 0 : i32
    %c0_i32_0 = arith.constant 0 : i32
    %c0_i32_1 = arith.constant 0 : i32
    return %arg0, %c0_i32, %c0_i32_0 : i32, i32, i32
  }
  func.func @transform_14(%arg0: i32) -> (i32, i32, i32) {
    %c0_i32 = arith.constant 0 : i32
    %c0_i32_0 = arith.constant 0 : i32
    %c0_i32_1 = arith.constant 0 : i32
    return %arg0, %c0_i32, %c0_i32_0 : i32, i32, i32
  }
  func.func @transform_15(%arg0: i32) -> (i32, i32, i32) {
    %c0_i32 = arith.constant 0 : i32
    %c0_i32_0 = arith.constant 0 : i32
    %c0_i32_1 = arith.constant 0 : i32
    return %arg0, %c0_i32, %c0_i32_0 : i32, i32, i32
  }
  func.func @transform_16(%arg0: i32) -> (i32, i32, i32) {
    %c0_i32 = arith.constant 0 : i32
    %c0_i32_0 = arith.constant 0 : i32
    %c0_i32_1 = arith.constant 0 : i32
    return %arg0, %c0_i32, %c0_i32_0 : i32, i32, i32
  }
  func.func @transform_17(%arg0: i32) -> (i32, i32, i32) {
    %c0_i32 = arith.constant 0 : i32
    %c0_i32_0 = arith.constant 0 : i32
    %c0_i32_1 = arith.constant 0 : i32
    return %arg0, %c0_i32, %c0_i32_0 : i32, i32, i32
  }
  func.func @transform_18(%arg0: i32) -> (i32, i32, i32) {
    %c0_i32 = arith.constant 0 : i32
    %c0_i32_0 = arith.constant 0 : i32
    %c0_i32_1 = arith.constant 0 : i32
    %c0_i32_2 = arith.constant 0 : i32
    return %c0_i32, %c0_i32_0, %c0_i32_1 : i32, i32, i32
  }
}

</mosaic_0001>

<bundles_post_ra>
// kernel: encoder_forward.1
= control target key start
LH: loop header
LB: loop body
LE: loop exit
PB: predicated region body
PF: predicated region fallthrough
CT: control target
= control target key end

     0   :  { %s6415_s0 = inlined_call_operand.vmem [shape: f32[2,8,128], index: 0, kind: input, shape index: {}]   ;;  %s6416_s1 = inlined_call_operand.vmem [shape: f32[2,8], index: 1, kind: input, shape index: {}]   ;;  %s6417_s2 = inlined_call_operand.vmem [shape: bf16[2,128,128], index: 2, kind: input, shape index: {}]   ;;  %s6418_s3 = inlined_call_operand.hbm [shape: bf16[2,128,128], index: 3, kind: input, shape index: {}]   ;;  %s6419_s4 = inlined_call_operand.hbm [shape: bf16[2,128,128], index: 4, kind: input, shape index: {}]   ;;  %s6420_s5 = inlined_call_operand.hbm [shape: bf16[2,128,128], index: 5, kind: input, shape index: {}]   ;;  %s6421_s6 = inlined_call_operand.vmem [shape: f32[2,1,128], index: 6, kind: input, shape index: {}]   ;;  %s6422_s7 = inlined_call_operand.vmem [shape: f32[2,1,128], index: 7, kind: input, shape index: {}]   ;;  %s6423_s8 = inlined_call_operand.vmem [shape: f32[2,1,128], index: 8, kind: input, shape index: {}]   ;;  %s6424_s9 = inlined_call_operand.vmem [shape: f32[2,1,128], index: 9, kind: input, shape index: {}]   ;;  %s6425_s10 = inlined_call_operand.vmem [shape: f32[2,1,128], index: 10, kind: input, shape index: {}]   ;;  %s6426_s11 = inlined_call_operand.vmem [shape: f32[2,1,128], index: 11, kind: input, shape index: {}]   ;;  %s6427_s12 = inlined_call_operand.hbm [shape: bf16[2,128,512], index: 12, kind: input, shape index: {}]   ;;  %s6428_s13 = inlined_call_operand.vmem [shape: f32[2,1,512], index: 13, kind: input, shape index: {}]   ;;  %s6429_s14 = inlined_call_operand.hbm [shape: bf16[2,512,128], index: 14, kind: input, shape index: {}]   ;;  %s6430_s15 = inlined_call_operand.vmem [shape: f32[2,1,128], index: 15, kind: input, shape index: {}]   ;;  %s6431_s16 = inlined_call_operand.vmem [shape: f32[2,1,128], index: 16, kind: input, shape index: {}]   ;;  %s6432_s17 = inlined_call_operand.vmem [shape: f32[2,1,128], index: 17, kind: input, shape index: {}]   ;;  %s6433_s18 = inlined_call_operand.hbm [shape: f32[2,8,128], index: 18, kind: output, shape index: {}]  }
   0x1   :  { %6447 = sst [smem:[#allocation22_spill]] %s6415_s0 }
   0x2   :  { %6448 = sst [smem:[#allocation23_spill]] %s6416_s1 }
   0x3   :  { %6449 = sst [smem:[#allocation24_spill]] %s6417_s2 }
   0x4   :  { %6450 = sst [smem:[#allocation25_spill]] %s6418_s3 }
   0x5   :  { %6451 = sst [smem:[#allocation26_spill]] %s6419_s4 }
   0x6   :  { %6452 = sst [smem:[#allocation27_spill]] %s6420_s5 }
   0x7   :  { %6453 = sst [smem:[#allocation28_spill]] %s6423_s8 }
   0x8   :  { %6454 = sst [smem:[#allocation29_spill]] %s6424_s9 }
   0x9   :  { %6455 = sst [smem:[#allocation30_spill]] %s6425_s10 }
   0xa   :  { %6456 = sst [smem:[#allocation31_spill]] %s6426_s11 }
   0xb   :  { %6457 = sst [smem:[#allocation32_spill]] %s6427_s12 }
   0xc   :  { %6458 = sst [smem:[#allocation33_spill]] %s6428_s13 }
   0xd   :  { %6459 = sst [smem:[#allocation34_spill]] %s6429_s14 }
   0xe   :  { %6460 = sst [smem:[#allocation35_spill]] %s6430_s15 }
   0xf   :  { %6461 = sst [smem:[#allocation36_spill]] %s6431_s16 }
  0x10   :  { %6462 = sst [smem:[#allocation37_spill]] %s6432_s17 }
  0x11   :  { %6463 = sst [smem:[#allocation38_spill]] %s6433_s18 }
  0x12   :  { %23 = vsyncpa [#allocation4], 0 }
  0x13   :  { %25 = vsyncpa [#allocation4 + $0x1], 0 }
  0x14   :  { %26 = vsyncpa [#allocation7], 0 }
  0x15   :  { %28 = vsyncpa [#allocation7 + $0x1], 0 }
  0x16   :  { %29 = vsyncpa [#allocation10], 0 }
  0x17   :  { %31 = vsyncpa [#allocation10 + $0x1], 0 }
  0x18   :  { %32 = vsyncpa [#allocation5], 0  ;;  %s5483_s27 = smov 0   ;;  %s5485_s28 = smov 0  }
  0x19   :  { %s5487_s29 = smov 0   ;;  %s5489_s30 = smov 0  }
  0x1a LB: > { %6464 = sst [smem:[#allocation17_spill]] %s5356_s28  ;;  %s5502_s0 = sadd.s32 4294967295, %s5364_s30   ;;  %s5364_s30 = sphi %s5489_s30, %s6510_s30   ;;  %s5360_s29 = sphi %s5487_s29, %s6513_s29   ;;  %s5356_s28 = sphi %s5485_s28, %s6512_s28   ;;  %s5352_s27 = sphi %s5483_s27, %s6511_s27  }
  0x1b   : > { %6465 = sst [smem:[#allocation18_spill]] %s5360_s29  ;;  %s5505_s19 = sadd.s32 1, %s5364_s30  }
  0x1c   : > { %6466 = sst [smem:[#allocation19_spill]] %s5505_s19  ;;  %s110_s1 = ssub.s32 %s5364_s30, %s5505_s19 }
  0x1d   : > { %s113_s20 = sadd.s32 1, %s5360_s29  ;;  %p111_p0 = scmp.eq.s32.totalorder %s110_s1, 0 }
  0x1e   : > { %p120_p1 = scmp.ne.s32.totalorder %s5360_s29, %s5356_s28  ;;  %p121_p2 = scmp.eq.s32.totalorder %s5364_s30, 0 }
  0x1f   : > { %p126_p3 = scmp.ne.s32.totalorder %s5356_s28, %s5352_s27  ;;  %p127_p5 = scmp.eq.s32.totalorder %s5502_s0, 0 }
  0x20   : > { %s5515_s21 = scalar_select %p111_p0, %s5360_s29, %s113_s20  }
  0x21   : > { %p122_p4 = por %p121_p2, %p120_p1  ;;  %p4933_p6 = scmp.lt.s32.totalorder %s5364_s30, 2 }
  0x22   : > { %6467 = sst [smem:[#allocation20_spill]] %s5515_s21  ;;  %p5519_p7 = por %p127_p5, %p126_p3 }
  0x23   : > { %s5524_s2 = sand.u32 1, %s5360_s29   ;;  %s5530_s24 = sshll.u32 %s5364_s30, 10 }
  0x24   : > { %s6468_s22 = scalar_select %p5519_p7, 1, 0 }
  0x25   : > { %s5527_s23 = sshll.u32 %s5524_s2, 6  ;;  %p5532_p8 = pnand %p4933_p6, %p122_p4 }
  0x26   : > { %s6438_s26 = sand.u32 1, %s5364_s30   ;;  %s6470_s4 = sld [smem:[#allocation26_spill]] }
  0x27   : > { %s574_s21 = scalar_lea.vmem [#allocation6], %s5527_s23  ;;  %s5550_s19 = scalar_lea.sflag [#allocation7], %s6438_s26 }
  0x28   : > { %s581_s29 = sshll.u32 %s574_s21, 4  ;;  %p5556_p12 = pneg %p5532_p8  ;;  %s5545_s29 = int_to_ptr.vmem [resolvable:$true] %s581_s29 }
  0x2c   : > { %s5541_s20 = scalar_lea.hbm %s6470_s4, %s5530_s24  ;;  %s5159_s1 = scalar_lea.hbm %s6470_s4, 2048 }
  0x2d   : > { %s5154_s18 = scalar_lea.hbm %s5541_s20, 1024  ;;  %p5160_p1 = scmp.lt.s32.totalorder %s5541_s20, %s6470_s4 }
  0x2e   : > { %p5155_p11 = scmp.ne.s32.totalorder %s5541_s20, %s5154_s18  ;;  %p5161_p2 = scmp.lt.s32.totalorder %s5159_s1, %s5154_s18 }
  0x30   : > { %p5157_p13 = pnand %p5556_p12, %p5155_p11  ;;  %p5162_p3 = por %p5161_p2, %p5160_p1 }
  0x32   : > { %p5158_p0 = pneg %p5157_p13 }
  0x34   : > { %p5163_p4 = pnand %p5162_p3, %p5158_p0 }
  0x36   : > { %5166 = shalt.err (!%p5163_p4)
}
  0x37   : > { %s5167_s26 = scalar_lea.vmem %s5545_s29, 1024  ;;  %s5366_s15 = smov [#allocation6]  }
  0x38   : > { %p5168_p5 = scmp.ne.s32.totalorder %s5545_s29, %s5167_s26  ;;  %s5172_s27 = sshll.u32 %s5366_s15, 4  ;;  %s5173_s27 = int_to_ptr.vmem [resolvable:$false] %s5172_s27 }
  0x39   : > { %s5174_s21 = scalar_lea.vmem %s5173_s27, 2048  ;;  %p5175_p13 = scmp.lt.s32.totalorder %s5545_s29, %s5173_s27 }
  0x3a   : > { %p5170_p6 = pnand %p5168_p5, %p5556_p12  ;;  %p5176_p9 = scmp.lt.s32.totalorder %s5174_s21, %s5167_s26 }
  0x3c   : > { %p5171_p11 = pneg %p5170_p6  ;;  %p5177_p10 = por %p5176_p9, %p5175_p13 }
  0x3e   : > { %p5178_p7 = pnand %p5177_p10, %p5171_p11 }
  0x40   : > { %5181 = shalt.err (!%p5178_p7)
}
  0x41   : > { %s6440_s13 = smov 64   ;;  %s6442_s15 = smov 4  }
  0x42   : > { %4923 = dma.hbm_to_vmem [thread:$0]  (!%p5532_p8), %s5541_s20, 1024, %s5545_s29, %s5550_s19, %s6440_s13, %s6440_s13, %s6442_s15  }
  0x43   : > { %p6472_p7 = scmp.lt.s32.totalorder %s5364_s30, 3  ;;  %p6473_p9 = scmp.ge.s32.totalorder %s5364_s30, 1 }
  0x44   : > { %s4452_s18 = sshll.u32 %s5524_s2, 8  ;;  %s6444_s26 = sshll.u32 %s5364_s30, 12 }
  0x45   : > { %p5586_p10 = pnand %p6473_p9, %p6472_p7  ;;  %s6475_s12 = sld [smem:[#allocation32_spill]] }
  0x46   : > { %s652_s4 = scalar_lea.vmem [#allocation9], %s4452_s18  ;;  %s6476_s20 = sand.u32 1, %s5364_s30  }
  0x47   : > { %s6474_s16 = scalar_select %p5586_p10, 1, 0 }
  0x48   : > { %s659_s29 = sshll.u32 %s652_s4, 4  ;;  %s5605_s13 = scalar_lea.sflag [#allocation10], %s6476_s20  ;;  %s5601_s29 = int_to_ptr.vmem [resolvable:$true] %s659_s29 }
  0x4b   : > { %s5597_s21 = scalar_lea.hbm %s6475_s12, %s6444_s26  ;;  %s5187_s27 = scalar_lea.hbm %s6475_s12, 8192 }
  0x4c   : > { %s5182_s15 = scalar_lea.hbm %s5597_s21, 4096  ;;  %p5188_p3 = scmp.lt.s32.totalorder %s5597_s21, %s6475_s12 }
  0x4d   : > { %p5183_p0 = scmp.ne.s32.totalorder %s5597_s21, %s5182_s15  ;;  %p5189_p4 = scmp.lt.s32.totalorder %s5187_s27, %s5182_s15 }
  0x4f   : > { %p5185_p1 = pnand %p5183_p0, %p5556_p12  ;;  %p5190_p5 = por %p5189_p4, %p5188_p3 }
  0x51   : > { %p5186_p2 = pneg %p5185_p1 }
  0x53   : > { %p5191_p6 = pnand %p5190_p5, %p5186_p2 }
  0x55   : > { %5194 = shalt.err (!%p5191_p6)
}
  0x56   : > { %s5195_s4 = scalar_lea.vmem %s5601_s29, 4096  ;;  %s5369_s20 = smov [#allocation9]  }
  0x57   : > { %p5196_p11 = scmp.ne.s32.totalorder %s5601_s29, %s5195_s4  ;;  %s5200_s11 = sshll.u32 %s5369_s20, 4  ;;  %s5201_s11 = int_to_ptr.vmem [resolvable:$false] %s5200_s11 }
  0x58   : > { %s5202_s1 = scalar_lea.vmem %s5201_s11, 8192  ;;  %p5203_p9 = scmp.lt.s32.totalorder %s5601_s29, %s5201_s11 }
  0x59   : > { %p5198_p13 = pnand %p5196_p11, %p5556_p12  ;;  %p5204_p0 = scmp.lt.s32.totalorder %s5202_s1, %s5195_s4 }
  0x5b   : > { %p5199_p7 = pneg %p5198_p13  ;;  %p5205_p1 = por %p5204_p0, %p5203_p9 }
  0x5d   : > { %p5206_p10 = pnand %p5205_p1, %p5199_p7 }
  0x5f   : > { %5209 = shalt.err (!%p5206_p10)
}
  0x60   : > { %s5370_s10 = smov 256   ;;  %s5371_s15 = smov 16  }
  0x61   : > { %4929 = dma.hbm_to_vmem [thread:$0]  (!%p5532_p8), %s5597_s21, 4096, %s5601_s29, %s5605_s13, %s5370_s10, %s5370_s10, %s5371_s15  }
  0x62   : > { %s6477_s26 = sshll.u32 %s5364_s30, 12  ;;  %s6478_s14 = sld [smem:[#allocation34_spill]] }
  0x63   : > { %s680_s11 = scalar_lea.vmem [#allocation11], %s4452_s18  ;;  %s6479_s3 = sld [smem:[#allocation25_spill]] }
  0x64   : > { %s687_s1 = sshll.u32 %s680_s11, 4  ;;  %s553_s21 = scalar_lea.vmem [#allocation3], %s5527_s23  ;;  %s5637_s1 = int_to_ptr.vmem [resolvable:$true] %s687_s1 }
  0x65   : > { %s560_s30 = sshll.u32 %s553_s21, 4  ;;  %s550_s29 = scalar_lea.sflag [#allocation4], %s5524_s2  ;;  %s5646_s30 = int_to_ptr.vmem [resolvable:$true] %s560_s30 }
  0x68   : > { %s5633_s20 = scalar_lea.hbm %s6478_s14, %s6477_s26 }
  0x69   : > { %s5643_s8 = scalar_lea.hbm %s6479_s3, %s5530_s24  ;;  %s5215_s26 = scalar_lea.hbm %s6479_s3, 2048 }
  0x6a   : > { %s5210_s10 = scalar_lea.hbm %s5643_s8, 1024  ;;  %p5216_p4 = scmp.lt.s32.totalorder %s5643_s8, %s6479_s3 }
  0x6b   : > { %p5211_p10 = scmp.ne.s32.totalorder %s5643_s8, %s5210_s10  ;;  %p5217_p5 = scmp.lt.s32.totalorder %s5215_s26, %s5210_s10 }
  0x6d   : > { %p5213_p2 = pnand %p5211_p10, %p5556_p12  ;;  %p5218_p6 = por %p5217_p5, %p5216_p4 }
  0x6f   : > { %p5214_p3 = pneg %p5213_p2 }
  0x71   : > { %p5219_p11 = pnand %p5218_p6, %p5214_p3 }
  0x73   : > { %5222 = shalt.err (!%p5219_p11)
}
  0x74   : > { %s5223_s2 = scalar_lea.vmem %s5646_s30, 1024  ;;  %s5372_s27 = smov [#allocation3]  }
  0x75   : > { %p5224_p13 = scmp.ne.s32.totalorder %s5646_s30, %s5223_s2  ;;  %s5228_s4 = sshll.u32 %s5372_s27, 4  ;;  %s5229_s4 = int_to_ptr.vmem [resolvable:$false] %s5228_s4 }
  0x76   : > { %s5230_s11 = scalar_lea.vmem %s5229_s4, 2048  ;;  %p5231_p0 = scmp.lt.s32.totalorder %s5646_s30, %s5229_s4 }
  0x77   : > { %p5226_p7 = pnand %p5224_p13, %p5556_p12  ;;  %p5232_p1 = scmp.lt.s32.totalorder %s5230_s11, %s5223_s2 }
  0x79   : > { %p5227_p9 = pneg %p5226_p7  ;;  %p5233_p10 = por %p5232_p1, %p5231_p0 }
  0x7b   : > { %p5234_p2 = pnand %p5233_p10, %p5227_p9 }
  0x7d   : > { %5237 = shalt.err (!%p5234_p2)
}
  0x7e   : > { %s6480_s21 = smov 4   ;;  %s6481_s10 = smov 64  }
  0x7f   : > { %4920 = dma.hbm_to_vmem [thread:$0]  (!%p5532_p8), %s5643_s8, 1024, %s5646_s30, %s550_s29, %s6481_s10, %s6481_s10, %s6480_s21  }
  0x80   : > { %s6482_s5 = sld [smem:[#allocation27_spill]]  ;;  %s595_s9 = scalar_lea.vmem [#allocation8], %s5527_s23 }
  0x81   : > { %s602_s12 = sshll.u32 %s595_s9, 4  ;;  %s603_s12 = int_to_ptr.vmem [resolvable:$true] %s602_s12 }
  0x86   : > { %s5676_s26 = scalar_lea.hbm %s6482_s5, %s5530_s24  ;;  %s5243_s8 = scalar_lea.hbm %s6482_s5, 2048 }
  0x87   : > { %s5238_s2 = scalar_lea.hbm %s5676_s26, 1024  ;;  %p5244_p6 = scmp.lt.s32.totalorder %s5676_s26, %s6482_s5 }
  0x88   : > { %p5239_p3 = scmp.ne.s32.totalorder %s5676_s26, %s5238_s2  ;;  %p5245_p11 = scmp.lt.s32.totalorder %s5243_s8, %s5238_s2 }
  0x8a   : > { %p5241_p4 = pnand %p5239_p3, %p5556_p12  ;;  %p5246_p13 = por %p5245_p11, %p5244_p6 }
  0x8c   : > { %p5242_p5 = pneg %p5241_p4 }
  0x8e   : > { %p5247_p7 = pnand %p5246_p13, %p5242_p5 }
  0x90   : > { %5250 = shalt.err (!%p5247_p7)
}
  0x91   : > { %s5251_s23 = scalar_lea.vmem %s603_s12, 1024  ;;  %s5373_s24 = smov [#allocation8]  }
  0x92   : > { %p5252_p9 = scmp.ne.s32.totalorder %s603_s12, %s5251_s23  ;;  %s5256_s11 = sshll.u32 %s5373_s24, 4  ;;  %s5257_s11 = int_to_ptr.vmem [resolvable:$false] %s5256_s11 }
  0x93   : > { %s5258_s18 = scalar_lea.vmem %s5257_s11, 2048  ;;  %p5259_p10 = scmp.lt.s32.totalorder %s603_s12, %s5257_s11 }
  0x94   : > { %p5254_p0 = pnand %p5252_p9, %p5556_p12  ;;  %p5260_p2 = scmp.lt.s32.totalorder %s5258_s18, %s5251_s23 }
  0x96   : > { %p5255_p1 = pneg %p5254_p0  ;;  %p5261_p3 = por %p5260_p2, %p5259_p10 }
  0x98   : > { %p5262_p4 = pnand %p5261_p3, %p5255_p1 }
  0x9a   : > { %5265 = shalt.err (!%p5262_p4)
}
  0x9b   : > { %4926 = dma.hbm_to_vmem [thread:$0]  (!%p5532_p8), %s5676_s26, 1024, %s603_s12, %s5550_s19, %s6481_s10, %s6481_s10, %s6480_s21  }
  0x9c   : > { %s5266_s15 = scalar_lea.hbm %s5633_s20, 4096  ;;  %s5271_s27 = scalar_lea.hbm %s6478_s14, 8192 }
  0x9d   : > { %p5267_p5 = scmp.ne.s32.totalorder %s5633_s20, %s5266_s15  ;;  %p5272_p13 = scmp.lt.s32.totalorder %s5633_s20, %s6478_s14 }
  0x9e   : > { %p5273_p7 = scmp.lt.s32.totalorder %s5271_s27, %s5266_s15 }
  0x9f   : > { %p5269_p6 = pnand %p5267_p5, %p5556_p12 }
  0xa0   : > { %p5274_p9 = por %p5273_p7, %p5272_p13 }
  0xa1   : > { %p5270_p11 = pneg %p5269_p6 }
  0xa3   : > { %p5275_p0 = pnand %p5274_p9, %p5270_p11 }
  0xa5   : > { %5278 = shalt.err (!%p5275_p0)
}
  0xa6   : > { %s5279_s19 = scalar_lea.vmem %s5637_s1, 4096  ;;  %s5374_s26 = smov [#allocation11]  }
  0xa7   : > { %p5280_p1 = scmp.ne.s32.totalorder %s5637_s1, %s5279_s19  ;;  %s5284_s12 = sshll.u32 %s5374_s26, 4  ;;  %s5285_s12 = int_to_ptr.vmem [resolvable:$false] %s5284_s12 }
  0xa8   : > { %s5286_s30 = scalar_lea.vmem %s5285_s12, 8192  ;;  %p5287_p3 = scmp.lt.s32.totalorder %s5637_s1, %s5285_s12 }
  0xa9   : > { %p5282_p10 = pnand %p5280_p1, %p5556_p12  ;;  %p5288_p4 = scmp.lt.s32.totalorder %s5286_s30, %s5279_s19 }
  0xab   : > { %p5283_p2 = pneg %p5282_p10  ;;  %p5289_p5 = por %p5288_p4, %p5287_p3 }
  0xad   : > { %p5290_p6 = pnand %p5289_p5, %p5283_p2 }
  0xaf   : > { %5293 = shalt.err (!%p5290_p6)
}
  0xb0   : > { %4932 = dma.hbm_to_vmem [thread:$0]  (!%p5532_p8), %s5633_s20, 4096, %s5637_s1, %s5605_s13, %s6481_s10, %s6481_s10, %s6480_s21  }
  0xb1   : > { %p6483_p12 = scmp.ne.s32.totalorder %s6474_s16, 0 }
  0xb3   : > { %717 = sbr.rel (%p6483_p12) target bundleno = 2646 (0xa56), region = 92 }
  0xb8   : > { %s5726_s17 = sand.u32 1, %s5356_s28   ;;  %p6484_p11 = scmp.ne.s32.totalorder %s6468_s22, 0 }
  0xb9   : > { %s4459_s29 = sshll.u32 %s5726_s17, 6  ;;  %s720_s23 = scalar_lea.sflag [#allocation4], %s5726_s17 }
  0xba   : > { %s5730_s24 = scalar_lea.vmem [#allocation3], %s4459_s29 }
  0xbb   : > { %5335 = dma.done.wait (%p6484_p11), %s720_s23, 1024  }
  0xbc   : > { %5337 = vsyncadd (%p6484_p11), %s720_s23, 4294966272  ;;  %s728_s25 = sand.u32 1, %s5502_s0   ;;  %s5737_s16 = scalar_lea.vmem [#allocation6], %s4459_s29 }
  0xbd   : > { %s729_s13 = scalar_lea.sflag [#allocation7], %s728_s25 }
  0xbe   : > { %5339 = dma.done.wait (%p6484_p11), %s729_s13, 2048  }
  0xbf   : > { %5341 = vsyncadd (%p6484_p11), %s729_s13, 4294965248  ;;  %s4462_s20 = sshll.u32 %s5726_s17, 8  ;;  %s5744_s1 = scalar_lea.vmem [#allocation8], %s4459_s29 }
  0xc0   : > { %s747_s21 = scalar_lea.sflag [#allocation10], %s728_s25  ;;  %s5746_s10 = scalar_lea.vmem [#allocation9], %s4462_s20 }
  0xc1   : > { %6485 = sst [smem:[#allocation21_spill]] %s5746_s10 }
  0xc2   : > { %5343 = dma.done.wait (%p6484_p11), %s747_s21, 8192  }
  0xc3   : > { %5345 = vsyncadd (%p6484_p11), %s747_s21, 4294959104  ;;  %p863_p8 = scmp.lt.s32.totalorder %s5502_s0, 1  ;;  %s6486_s4 = sld [smem:[#allocation24_spill]] }
  0xc4   : > { %s6487_s29 = sld [smem:[#allocation28_spill]]  ;;  %s5804_s14 = scalar_lea.vmem [#allocation11], %s4462_s20 }
  0xc5   : > { %s5754_s11 = scalar_select %p863_p8, %s5502_s0, 1 }
  0xc6   : > { %s6491_s26 = sld [smem:[#allocation35_spill]]  ;;  %p4467_p13 = scmp.ne.s32.totalorder %s5502_s0, 0 }
  0xc7   : > { %s4614_s18 = sshll.u32 %s5754_s11, 6  ;;  %s6492_s17 = sld [smem:[#allocation33_spill]] }
  0xc8   : > { %s6493_s21 = sld [smem:[#allocation36_spill]] }
  0xc9   : > { %s5764_s8 = scalar_lea.vmem %s6486_s4, %s4614_s18  ;;  %s6490_s18 = sld [smem:[#allocation31_spill]] }
  0xca   : > { %s876_s23 = scalar_lea.vmem %s6487_s29, %s5754_s11  ;;  %s4466_s4 = sshll.u32 %s5754_s11, 2 }
  0xcb   : > { %s6494_s22 = sld [smem:[#allocation37_spill]] }
  0xcc   : > { %s892_s12 = scalar_lea.vmem %s6491_s26, %s5754_s11 }
  0xcd   : > { %s5794_s29 = scalar_lea.vmem %s6492_s17, %s4466_s4  ;;  %903 = sbr.rel (%p4467_p13) target bundleno = 215 (0xd7), region = 116 }
  0xce   : > { %s895_s3 = scalar_lea.vmem %s6493_s21, %s5754_s11 }
  0xcf   : > { %s885_s27 = scalar_lea.vmem %s6490_s18, %s5754_s11  ;;  %s6495_s18 = sld [smem:[#allocation22_spill]] (!%p4467_p13) }
  0xd1   : > { %s898_s9 = scalar_lea.vmem %s6494_s22, %s5754_s11 }
  0xd5   : > { %v904_v0 = vld [vmem:[%s6495_s18] sm:$0xff]  ;;  %v905_v1 = vld [vmem:[%s6495_s18 + $0x8] sm:$0xff] }
  0xd6   : > { %906 = vst [vmem:[#allocation2] sm:$0xff] %v904_v0  ;;  %907 = vst [vmem:[#allocation2 + $0x8] sm:$0xff] %v905_v1 }
  0xd7 PF: > { %v5000_v2 = vld [vmem:[%s5730_s24 + $0x38] sm:$0xff]   ;;  %v5375_v3 = vmov 0.0   ;;  %v5001_v4 = vld [vmem:[%s5764_s8 + $0x38] sm:$0xff]   ;;  %v5002_v5 = vld [vmem:[%s5730_s24 + $0x30] sm:$0xff]   ;;  %vm5376_vm0 = vmmov 0   ;;  %s6497_s30 = scalar_lea.vmem %s6421_s6, %s5754_s11  ;;  %s5378_s17 = smov 96   ;;  %v1272_v53 = vlaneseq }
  0xd8   : > { %4747 = vmatprep.subr.bf16.mxu1 %v5375_v3  ;;  %4727 = vmatprep.subr.bf16.mxu0 %v5375_v3  ;;  %v5003_v6 = vld [vmem:[%s5764_s8 + $0x30] sm:$0xff]   ;;  %v5004_v7 = vld [vmem:[%s5730_s24 + $0x28] sm:$0xff]   ;;  %v5005_v8 = vld [vmem:[%s5764_s8 + $0x28] sm:$0xff]   ;;  %s5379_s25 = smov 64   ;;  %v5380_v51 = vmov 1983009808  }
  0xd9   : > { %4748 = vmatpush3.bf16.msra.mxu1 %v5000_v2  ;;  %4763 = vmatprep.mubr.msk.bf16.mxu1 %vm5376_vm0, %v5375_v3  ;;  %v5006_v9 = vld [vmem:[%s5730_s24 + $0x20] sm:$0xff]   ;;  %v5007_v10 = vld [vmem:[%s5764_s8 + $0x20] sm:$0xff]   ;;  %v5008_v11 = vld [vmem:[%s5730_s24 + $0x18] sm:$0xff]   ;;  %v1270_v52 = vunpack.c.l.s4 %v5380_v51  ;;  %v5920_v57 = vshrl.u32 %v1272_v53, 7  ;;  %v5381_v58 = vmov 1934713408  }
  0xda   : > { %4728 = vmatpush3.bf16.msra.mxu0 %v5001_v4  ;;  %4749 = vmatprep.subr.bf16.mxu1 %v5375_v3  ;;  %v5009_v12 = vld [vmem:[%s5764_s8 + $0x18] sm:$0xff]   ;;  %v5010_v13 = vld [vmem:[%s5730_s24 + $0x10] sm:$0xff]   ;;  %v5011_v14 = vld [vmem:[%s5764_s8 + $0x10] sm:$0xff]   ;;  %v1302_v59 = vunpack.c.l.s4 %v5381_v58  ;;  %vm2147_vm1 = vcmask 261120   ;;  %vm2644_vm2 = vcmask 1043456   ;;  %s6499_s22 = sld [smem:[#allocation23_spill]] }
  0xdb   : > { %4729 = vmatprep.subr.bf16.mxu0 %v5375_v3  ;;  %4743 = vmatprep.mubr.msk.bf16.mxu0 %vm5376_vm0, %v5375_v3  ;;  %v5012_v15 = vld [vmem:[%s5730_s24 + $0x8] sm:$0xff]   ;;  %v5013_v16 = vld [vmem:[%s5764_s8 + $0x8] sm:$0xff]   ;;  %v5014_v17 = vld [vmem:[%s5730_s24] sm:$0xff]   ;;  %v1271_v56 = vunpack.c.0.s8 %v1270_v52  ;;  %vm2560_vm4 = vcmask 64512   ;;  %vm3324_vm5 = vcmask 523264   ;;  %vm3327_vm6 = vcmask 785408  }
  0xdc   : > { %v5015_v20 = vld [vmem:[%s5764_s8] sm:$0xff]   ;;  %v5016_v22 = vld [vmem:[%s5737_s16 + $0x38] sm:$0xff]   ;;  %v5018_v24 = vld [vmem:[%s5737_s16 + $0x28] sm:$0xff]   ;;  %s6496_s8 = scalar_lea.vmem %s6422_s7, %s5754_s11  ;;  %v1303_v4 = vunpack.c.0.s8 %v1302_v59  ;;  %s6501_s10 = sld [smem:[#allocation29_spill]] }
  0xdd   : > { %4750 = vmatpush3.bf16.msra.mxu1 %v5002_v5  ;;  %v908_v18 = vld [vmem:[#allocation2] sm:$0xff]  ;;  %v909_v19 = vld [vmem:[#allocation2 + $0x8] sm:$0xff]  ;;  %v5019_v25 = vld [vmem:[%s5737_s16 + $0x20] sm:$0xff]   ;;  %v5923_v0 = vsub.s32 %v1271_v56, %v5920_v57  ;;  %p4934_p7 = scmp.eq.s32.totalorder %s5502_s0, 1 }
  0xde   : > { %4730 = vmatpush3.bf16.msra.mxu0 %v5003_v6  ;;  %4751 = vmatprep.subr.bf16.mxu1 %v5375_v3  ;;  %v910_v21 = vpack.c.bf16 %v909_v19, %v908_v18  ;;  %v5017_v23 = vld [vmem:[%s5737_s16 + $0x30] sm:$0xff]   ;;  %v5020_v26 = vld [vmem:[%s5737_s16 + $0x18] sm:$0xff]   ;;  %v5022_v28 = vld [vmem:[%s5737_s16 + $0x8] sm:$0xff]  }
  0xdf   : > { %4731 = vmatprep.subr.bf16.mxu0 %v5375_v3  ;;  %v5021_v27 = vld [vmem:[%s5737_s16 + $0x10] sm:$0xff]   ;;  %v5023_v29 = vld [vmem:[%s5737_s16] sm:$0xff]   ;;  %s5377_s16 = smov 32  }
  0xe0   : > { %v4477_v30 = vld [vmem:[%s6496_s8] ss:$0 sm:$0xff]  ;;  %s6503_s8 = sld [smem:[#allocation30_spill]] }
  0xe1   : > { %4752 = vmatpush3.bf16.msra.mxu1 %v5004_v7  ;;  %v4468_v32 = vld [vmem:[%s6497_s30] ss:$0 sm:$0xff] }
  0xe2   : > { %4732 = vmatpush3.bf16.msra.mxu0 %v5005_v8  ;;  %4753 = vmatprep.subr.bf16.mxu1 %v5375_v3  ;;  %v4486_v44 = vld [vmem:[%s876_s23] ss:$0 sm:$0xff]  ;;  %s6502_s4 = scalar_lea.vmem %s6501_s10, %s5754_s11  ;;  %s5385_s23 = smov [#allocation12]  }
  0xe3   : > { %4733 = vmatprep.subr.bf16.mxu0 %v5375_v3  ;;  %s4196_s15 = sshll.u32 %s5385_s23, 4  ;;  %s4197_s15 = int_to_ptr.vmem [resolvable:$true] %s4196_s15 }
  0xe4   : > { %p5301_p10 = scmp.lt.s32.totalorder %s4197_s15, %s4197_s15 }
  0xe5   : > { %4754 = vmatpush3.bf16.msra.mxu1 %v5006_v9 }
  0xe6   : > { %4734 = vmatpush3.bf16.msra.mxu0 %v5007_v10  ;;  %4755 = vmatprep.subr.bf16.mxu1 %v5375_v3  ;;  %s6504_s19 = scalar_lea.vmem %s6503_s8, %s5754_s11 }
  0xe7   : > { %4735 = vmatprep.subr.bf16.mxu0 %v5375_v3 }
  0xe9   : > { %4756 = vmatpush3.bf16.msra.mxu1 %v5008_v11 }
  0xea   : > { %4736 = vmatpush3.bf16.msra.mxu0 %v5009_v12  ;;  %4757 = vmatprep.subr.bf16.mxu1 %v5375_v3 }
  0xeb   : > { %4737 = vmatprep.subr.bf16.mxu0 %v5375_v3 }
  0xed   : > { %4758 = vmatpush3.bf16.msra.mxu1 %v5010_v13 }
  0xee   : > { %4738 = vmatpush3.bf16.msra.mxu0 %v5011_v14  ;;  %4759 = vmatprep.subr.bf16.mxu1 %v5375_v3 }
  0xef   : > { %4739 = vmatprep.subr.bf16.mxu0 %v5375_v3 }
  0xf1   : > { %4760 = vmatpush3.bf16.msra.mxu1 %v5012_v15  ;;  %v5930_v15 = vsub.s32 %v1303_v4, %v5920_v57 }
  0xf2   : > { %4740 = vmatpush3.bf16.msra.mxu0 %v5013_v16  ;;  %4761 = vmatprep.subr.bf16.mxu1 %v5375_v3 }
  0xf3   : > { %4741 = vmatprep.subr.bf16.mxu0 %v5375_v3 }
  0xf5   : > { %4762 = vmatpush3.bf16.msra.mxu1 %v5014_v17 }
  0xf6   : > { %4742 = vmatpush3.bf16.msra.mxu0 %v5015_v20  ;;  %4787 = vmatprep.subr.bf16.mxu1 %v5375_v3 }
  0xf7   : > { %4767 = vmatprep.subr.bf16.mxu0 %v5375_v3 }
  0xf8   : > { %4764 = vmatmul.mubr.bf16.vlgmr.msra.gmra.mxu1 %v910_v21 }
  0xf9   : > { %4744 = vmatmul.mubr.bf16.vlgmr.msra.gmra.mxu0 %v910_v21  ;;  %4789 = vmatprep.mubr.msk.bf16.mxu1 %vm5376_vm0, %v5375_v3 }
  0xfa   : > { %4768 = vmatpush3.bf16.msra.mxu0 %v5016_v22  ;;  %4783 = vmatprep.mubr.msk.bf16.mxu0 %vm5376_vm0, %v5375_v3 }
  0xfb   : > { %4769 = vmatprep.subr.bf16.mxu0 %v5375_v3 }
  0xfe   : > { %4770 = vmatpush3.bf16.msra.mxu0 %v5017_v23 }
  0xff   : > { %4771 = vmatprep.subr.bf16.mxu0 %v5375_v3 }
 0x102   : > { %4772 = vmatpush3.bf16.msra.mxu0 %v5018_v24 }
 0x103   : > { %4773 = vmatprep.subr.bf16.mxu0 %v5375_v3 }
 0x106   : > { %4774 = vmatpush3.bf16.msra.mxu0 %v5019_v25 }
 0x107   : > { %4775 = vmatprep.subr.bf16.mxu0 %v5375_v3 }
 0x10a   : > { %4776 = vmatpush3.bf16.msra.mxu0 %v5020_v26 }
 0x10b   : > { %4777 = vmatprep.subr.bf16.mxu0 %v5375_v3 }
 0x10e   : > { %4778 = vmatpush3.bf16.msra.mxu0 %v5021_v27 }
 0x10f   : > { %4779 = vmatprep.subr.bf16.mxu0 %v5375_v3 }
 0x112   : > { %4780 = vmatpush3.bf16.msra.mxu0 %v5022_v28 }
 0x113   : > { %4781 = vmatprep.subr.bf16.mxu0 %v5375_v3 }
 0x116   : > { %4782 = vmatpush3.bf16.msra.mxu0 %v5023_v29 }
 0x117   : > { %4835 = vmatprep.subr.bf16.mxu0 %v5375_v3 }
 0x119   : > { %4784 = vmatmul.mubr.bf16.vlgmr.msra.gmra.mxu0 %v910_v21 }
 0x11a   : > { %4837 = vmatprep.mubr.msk.bf16.mxu0 %vm5376_vm0, %v5375_v3 }
 0x1b8   : > { %v1128_v31 = vpop.f32.mrf.mxu1 }
 0x1b9   : > { %v1129_v33 = vadd.f32 %v4477_v30, %v1128_v31  ;;  %v1016_v34 = vpop.f32.mrf.mxu0 }
 0x1ba   : > { %v4765_v35 = vpop.f32.mrf.mxu1  ;;  %v1017_v36 = vadd.f32 %v4468_v32, %v1016_v34 }
 0x1bb   : > { %1561 = vrot.lane.b32.xlu1 %v1129_v33, %s5377_s16  ;;  %1549 = vrot.lane.b32.xlu0 %v1129_v33, %s5378_s17  ;;  %v4745_v37 = vpop.f32.mrf.mxu0 }
 0x1bc   : > { %v1131_v38 = vpop.f32.mrf.mxu1 }
 0x1bd   : > { %v1019_v39 = vpop.f32.mrf.mxu0  ;;  %v5889_v42 = vadd.f32 %v4477_v30, %v1131_v38 }
 0x1be   : > { %v4766_v40 = vpop.f32.mrf.mxu1  ;;  %v5895_v43 = vadd.f32 %v4468_v32, %v1019_v39 }
 0x1bf   : > { %1555 = vrot.lane.b32.xlu0 %v1129_v33, %s5379_s25  ;;  %1249 = vrot.lane.b32.xlu1 %v1017_v36, %s5378_s17  ;;  %v4746_v41 = vpop.f32.mrf.mxu0 }
 0x1c3   : > { %1255 = vrot.lane.b32.xlu0 %v1017_v36, %s5379_s25  ;;  %1261 = vrot.lane.b32.xlu1 %v1017_v36, %s5377_s16 }
 0x1c7   : > { %1551 = vrot.lane.b32.xlu0 %v5889_v42, %s5378_s17  ;;  %1557 = vrot.lane.b32.xlu1 %v5889_v42, %s5379_s25 }
 0x1cb   : > { %1563 = vrot.lane.b32.xlu0 %v5889_v42, %s5377_s16  ;;  %1251 = vrot.lane.b32.xlu1 %v5895_v43, %s5378_s17 }
 0x1cf   : > { %1257 = vrot.lane.b32.xlu0 %v5895_v43, %s5379_s25  ;;  %1263 = vrot.lane.b32.xlu1 %v5895_v43, %s5377_s16 }
 0x1d9   : > { %v1240_v45 = vpop.f32.mrf.mxu0 }
 0x1da   : > { %v5910_v46 = vadd.f32 %v4486_v44, %v1240_v45 }
 0x1db   : > { %v4785_v47 = vpop.f32.mrf.mxu0 }
 0x1dc   : > { %1849 = vrot.lane.b32.xlu0 %v5910_v46, %s5378_s17  ;;  %1855 = vrot.lane.b32.xlu1 %v5910_v46, %s5379_s25 }
 0x1dd   : > { %v1243_v48 = vpop.f32.mrf.mxu0 }
 0x1de   : > { %v5918_v49 = vadd.f32 %v4486_v44, %v1243_v48 }
 0x1df   : > { %v4786_v50 = vpop.f32.mrf.mxu0 }
 0x1e0   : > { %1861 = vrot.lane.b32.xlu0 %v5910_v46, %s5377_s16 }
 0x22d   : > { %v1562_v54 = vpop.permute.xlu1 %1561  ;;  %v1550_v55 = vpop.permute.xlu0 %1549 }
 0x22e   : > { %v1583_v1 = vcombine.low %v1550_v55, %v1562_v54  ;;  %v1584_v2 = vcombine.high %v1550_v55, %v1562_v54 }
 0x230   : > { %v1591_v13 = vrot.slane %v1583_v1, %v5923_v0  ;;  %v1598_v14 = vrot.slane %v1584_v2, %v5923_v0 }
 0x231   : > { %v1556_v60 = vpop.permute.xlu0 %1555  ;;  %v1250_v61 = vpop.permute.xlu1 %1249 }
 0x232   : > { %v1567_v62 = vcombine.low %v1129_v33, %v1556_v60  ;;  %v1568_v63 = vcombine.high %v1129_v33, %v1556_v60 }
 0x234   : > { %v1575_v7 = vrot.slane %v1567_v62, %v5923_v0  ;;  %v1582_v8 = vrot.slane %v1568_v63, %v5923_v0 }
 0x235   : > { %v1256_v5 = vpop.permute.xlu0 %1255  ;;  %v1262_v6 = vpop.permute.xlu1 %1261 }
 0x236   : > { %v1267_v9 = vcombine.low %v1017_v36, %v1256_v5  ;;  %v1268_v10 = vcombine.high %v1017_v36, %v1256_v5  ;;  %v1283_v11 = vcombine.low %v1250_v61, %v1262_v6  ;;  %v1284_v12 = vcombine.high %v1250_v61, %v1262_v6 }
 0x237   : > { %v1599_v20 = vcombine.low %v1575_v7, %v1591_v13  ;;  %v1600_v21 = vcombine.high %v1575_v7, %v1591_v13  ;;  %v1615_v22 = vcombine.low %v1582_v8, %v1598_v14  ;;  %v1616_v23 = vcombine.high %v1582_v8, %v1598_v14 }
 0x238   : > { %v1275_v16 = vrot.slane %v1267_v9, %v5923_v0  ;;  %v1282_v17 = vrot.slane %v1268_v10, %v5923_v0  ;;  %v1291_v18 = vrot.slane %v1283_v11, %v5923_v0  ;;  %v1298_v19 = vrot.slane %v1284_v12, %v5923_v0 }
 0x239   : > { %v1607_v28 = vrot.slane %v1599_v20, %v5930_v15  ;;  %v1614_v29 = vrot.slane %v1600_v21, %v5930_v15  ;;  %v1623_v30 = vrot.slane %v1615_v22, %v5930_v15  ;;  %v1630_v31 = vrot.slane %v1616_v23, %v5930_v15  ;;  %v1552_v36 = vpop.permute.xlu0 %1551  ;;  %v1558_v48 = vpop.permute.xlu1 %1557 }
 0x23a   : > { %v1299_v24 = vcombine.low %v1275_v16, %v1291_v18  ;;  %v1300_v25 = vcombine.high %v1275_v16, %v1291_v18  ;;  %v1315_v26 = vcombine.low %v1282_v17, %v1298_v19  ;;  %v1316_v27 = vcombine.high %v1282_v17, %v1298_v19 }
 0x23b   : > { %v1703_v37 = vcombine.low %v1607_v28, %v1614_v29  ;;  %v4499_v38 = vcombine.high %v1607_v28, %v1614_v29  ;;  %v1719_v39 = vcombine.low %v1623_v30, %v1630_v31  ;;  %v4500_v40 = vcombine.high %v1623_v30, %v1630_v31 }
 0x23c   : > { %v1307_v32 = vrot.slane %v1299_v24, %v5930_v15  ;;  %v1314_v33 = vrot.slane %v1300_v25, %v5930_v15  ;;  %v1323_v34 = vrot.slane %v1315_v26, %v5930_v15  ;;  %v1330_v35 = vrot.slane %v1316_v27, %v5930_v15 }
 0x23d   : > { %v1710_v50 = vrot.slane %v1703_v37, %v5923_v0  ;;  %v1718_v51 = vrot.slane %v4499_v38, %v5923_v0  ;;  %v1726_v52 = vrot.slane %v1719_v39, %v5923_v0  ;;  %v1734_v53 = vrot.slane %v4500_v40, %v5923_v0  ;;  %v1564_v54 = vpop.permute.xlu0 %1563  ;;  %v1252_v62 = vpop.permute.xlu1 %1251 }
 0x23e   : > { %v1403_v41 = vcombine.low %v1307_v32, %v1314_v33  ;;  %v4495_v44 = vcombine.high %v1307_v32, %v1314_v33  ;;  %v1419_v45 = vcombine.low %v1323_v34, %v1330_v35  ;;  %v4496_v47 = vcombine.high %v1323_v34, %v1330_v35 }
 0x23f   : > { %v1651_v60 = vcombine.low %v1552_v36, %v1564_v54  ;;  %v1652_v61 = vcombine.high %v1552_v36, %v1564_v54  ;;  %v1735_v63 = vcombine.low %v1710_v50, %v1718_v51  ;;  %v1751_v1 = vcombine.low %v1726_v52, %v1734_v53 }
 0x240   : > { %v5949_v55 = vrot.slane %v1403_v41, %v5923_v0  ;;  %v5952_v56 = vrot.slane %v4495_v44, %v5923_v0  ;;  %v5955_v58 = vrot.slane %v1419_v45, %v5923_v0  ;;  %v5958_v59 = vrot.slane %v4496_v47, %v5923_v0 }
 0x241   : > { %v1635_v2 = vcombine.low %v5889_v42, %v1558_v48  ;;  %v1636_v4 = vcombine.high %v5889_v42, %v1558_v48  ;;  %v1743_v7 = vrot.slane %v1735_v63, %v5930_v15  ;;  %v1759_v8 = vrot.slane %v1751_v1, %v5930_v15  ;;  %v1258_v42 = vpop.permute.xlu0 %1257  ;;  %v1264_v14 = vpop.permute.xlu1 %1263 }
 0x242   : > { %v1435_v5 = vcombine.low %v5949_v55, %v5952_v56  ;;  %v1451_v6 = vcombine.low %v5955_v58, %v5958_v59  ;;  %v1659_v9 = vrot.slane %v1651_v60, %v5923_v0  ;;  %v1666_v10 = vrot.slane %v1652_v61, %v5923_v0 }
 0x243   : > { %v1767_v11 = vcombine.low %v1743_v7, %v1759_v8  ;;  %v1643_v12 = vrot.slane %v1635_v2, %v5923_v0  ;;  %v1650_v13 = vrot.slane %v1636_v4, %v5923_v0  ;;  %v1768_v24 = vcombine.high %v1743_v7, %v1759_v8 }
 0x244   : > { %v1443_v17 = vrot.slane %v1435_v5, %v5930_v15  ;;  %v1459_v18 = vrot.slane %v1451_v6, %v5930_v15  ;;  %v1736_v25 = vcombine.high %v1710_v50, %v1718_v51  ;;  %v1752_v26 = vcombine.high %v1726_v52, %v1734_v53 }
 0x245   : > { %v1839_v16 = vpack.c.bf16 %v1767_v11, %v1767_v11  ;;  %v1667_v19 = vcombine.low %v1643_v12, %v1659_v9  ;;  %v1668_v20 = vcombine.high %v1643_v12, %v1659_v9  ;;  %v1683_v21 = vcombine.low %v1650_v13, %v1666_v10 }
 0x246   : > { %v1684_v22 = vcombine.high %v1650_v13, %v1666_v10  ;;  %v1335_v27 = vcombine.low %v5895_v43, %v1258_v42  ;;  %v1336_v28 = vcombine.high %v5895_v43, %v1258_v42  ;;  %v1351_v29 = vcombine.low %v1252_v62, %v1264_v14 }
 0x247   : > { %v2152_v23 = vsel %vm2147_vm1, %v1839_v16, 0  ;;  %v1352_v30 = vcombine.high %v1252_v62, %v1264_v14  ;;  %v1467_v31 = vcombine.low %v1443_v17, %v1459_v18  ;;  %v1675_v32 = vrot.slane %v1667_v19, %v5930_v15 }
 0x248   : > { %4788 = vmatpush3.bf16.xpose.msra.mxu1 %v2152_v23  ;;  %v1682_v33 = vrot.slane %v1668_v20, %v5930_v15  ;;  %v1691_v34 = vrot.slane %v1683_v21, %v5930_v15  ;;  %v1698_v35 = vrot.slane %v1684_v22, %v5930_v15  ;;  %v1840_v36 = vpack.c.bf16 %v1768_v24, %v1768_v24 }
 0x249   : > { %4793 = vmatprep.subr.bf16.mxu1 %v5375_v3  ;;  %v1750_v37 = vrot.slane %v1736_v25, %v5930_v15  ;;  %v1766_v38 = vrot.slane %v1752_v26, %v5930_v15  ;;  %v1343_v43 = vrot.slane %v1335_v27, %v5923_v0  ;;  %v1350_v39 = vrot.slane %v1336_v28, %v5923_v0 }
 0x24a   : > { %v1359_v40 = vrot.slane %v1351_v29, %v5923_v0  ;;  %v1366_v41 = vrot.slane %v1352_v30, %v5923_v0  ;;  %v1539_v44 = vpack.c.bf16 %v1467_v31, %v1467_v31  ;;  %v1771_v45 = vcombine.low %v1675_v32, %v1682_v33 }
 0x24b   : > { %v4501_v47 = vcombine.high %v1675_v32, %v1682_v33  ;;  %v1787_v48 = vcombine.low %v1691_v34, %v1698_v35  ;;  %v4502_v50 = vcombine.high %v1691_v34, %v1698_v35  ;;  %v2198_v51 = vsel %vm2147_vm1, %v1840_v36, 0 }
 0x24c   : > { %v1769_v52 = vcombine.low %v1750_v37, %v1766_v38  ;;  %v1367_v53 = vcombine.low %v1343_v43, %v1359_v40  ;;  %v1368_v54 = vcombine.high %v1343_v43, %v1359_v40  ;;  %v1383_v60 = vcombine.low %v1350_v39, %v1366_v41 }
 0x24d   : > { %v1436_v61 = vcombine.high %v5949_v55, %v5952_v56  ;;  %v1452_v62 = vcombine.high %v5955_v58, %v5958_v59  ;;  %v1384_v63 = vcombine.high %v1350_v39, %v1366_v41  ;;  %v1468_v1 = vcombine.high %v1443_v17, %v1459_v18 }
 0x24e   : > { %v1778_v2 = vrot.slane %v1771_v45, %v5923_v0  ;;  %v1786_v4 = vrot.slane %v4501_v47, %v5923_v0  ;;  %v1794_v5 = vrot.slane %v1787_v48, %v5923_v0  ;;  %v1802_v6 = vrot.slane %v4502_v50, %v5923_v0 }
 0x24f   : > { %4790 = vmatmul.mubr.msk.bf16.vlgmr.msra.gmra.mxu1 %vm2147_vm1, %v1539_v44  ;;  %v1841_v7 = vpack.c.bf16 %v1769_v52, %v1769_v52  ;;  %v1375_v8 = vrot.slane %v1367_v53, %v5930_v15  ;;  %v1382_v55 = vrot.slane %v1368_v54, %v5930_v15  ;;  %v1391_v56 = vrot.slane %v1383_v60, %v5930_v15 }
 0x250   : > { %4794 = vmatpush3.bf16.xpose.msra.mxu1 %v2198_v51  ;;  %4795 = vmatprep.mubr.msk.bf16.mxu1 %vm5376_vm0, %v5375_v3  ;;  %v1398_v58 = vrot.slane %v1384_v63, %v5930_v15  ;;  %v1540_v59 = vpack.c.bf16 %v1468_v1, %v1468_v1  ;;  %v1450_v9 = vrot.slane %v1436_v61, %v5930_v15  ;;  %v1850_v63 = vpop.permute.xlu0 %1849  ;;  %v1856_v1 = vpop.permute.xlu1 %1855 }
 0x251   : > { %4799 = vmatprep.subr.bf16.mxu1 %v5375_v3  ;;  %v1466_v10 = vrot.slane %v1452_v62, %v5930_v15  ;;  %v2244_v11 = vsel %vm2147_vm1, %v1841_v7, 0  ;;  %v1770_v12 = vcombine.high %v1750_v37, %v1766_v38  ;;  %v1803_v13 = vcombine.low %v1778_v2, %v1786_v4 }
 0x252   : > { %v1819_v42 = vcombine.low %v1794_v5, %v1802_v6  ;;  %v1471_v14 = vcombine.low %v1375_v8, %v1382_v55  ;;  %v4497_v16 = vcombine.high %v1375_v8, %v1382_v55  ;;  %v1487_v17 = vcombine.low %v1391_v56, %v1398_v58 }
 0x253   : > { %v4498_v18 = vcombine.high %v1391_v56, %v1398_v58  ;;  %v1469_v19 = vcombine.low %v1450_v9, %v1466_v10  ;;  %v1842_v20 = vpack.c.bf16 %v1770_v12, %v1770_v12  ;;  %v1811_v21 = vrot.slane %v1803_v13, %v5930_v15 }
 0x254   : > { %v1827_v22 = vrot.slane %v1819_v42, %v5930_v15  ;;  %v1478_v23 = vrot.slane %v1471_v14, %v5923_v0  ;;  %v1486_v24 = vrot.slane %v4497_v16, %v5923_v0  ;;  %v1494_v25 = vrot.slane %v1487_v17, %v5923_v0  ;;  %v1862_v8 = vpop.permute.xlu0 %1861 }
 0x255   : > { %v1502_v26 = vrot.slane %v4498_v18, %v5923_v0  ;;  %v1541_v27 = vpack.c.bf16 %v1469_v19, %v1469_v19  ;;  %v2290_v28 = vsel %vm2147_vm1, %v1842_v20, 0  ;;  %v1470_v32 = vcombine.high %v1450_v9, %v1466_v10 }
 0x256   : > { %v1835_v29 = vcombine.low %v1811_v21, %v1827_v22  ;;  %v1503_v30 = vcombine.low %v1478_v23, %v1486_v24  ;;  %v1836_v38 = vcombine.high %v1811_v21, %v1827_v22  ;;  %v1804_v43 = vcombine.high %v1778_v2, %v1786_v4 }
 0x257   : > { %4796 = vmatmul.mubr.msk.bf16.vlgmr.msra.gmra.mxu1 %vm2147_vm1, %v1540_v59  ;;  %v1519_v31 = vcombine.low %v1494_v25, %v1502_v26  ;;  %v1542_v34 = vpack.c.bf16 %v1470_v32, %v1470_v32  ;;  %v1820_v39 = vcombine.high %v1794_v5, %v1802_v6  ;;  %v1504_v51 = vcombine.high %v1478_v23, %v1486_v24 }
 0x258   : > { %4800 = vmatpush3.bf16.xpose.msra.mxu1 %v2244_v11  ;;  %4801 = vmatprep.mubr.msk.bf16.mxu1 %vm5376_vm0, %v5375_v3  ;;  %v1843_v33 = vpack.c.bf16 %v1835_v29, %v1835_v29  ;;  %v1511_v35 = vrot.slane %v1503_v30, %v5930_v15  ;;  %v1844_v41 = vpack.c.bf16 %v1836_v38, %v1836_v38 }
 0x259   : > { %4805 = vmatprep.subr.bf16.mxu1 %v5375_v3  ;;  %v1527_v36 = vrot.slane %v1519_v31, %v5930_v15  ;;  %v1818_v44 = vrot.slane %v1804_v43, %v5930_v15  ;;  %v1834_v45 = vrot.slane %v1820_v39, %v5930_v15  ;;  %v1520_v52 = vcombine.high %v1494_v25, %v1502_v26 }
 0x25a   : > { %v2336_v37 = vsel %vm2147_vm1, %v1843_v33, 0  ;;  %v2382_v48 = vsel %vm2147_vm1, %v1844_v41, 0  ;;  %v1518_v61 = vrot.slane %v1504_v51, %v5930_v15  ;;  %v1867_v2 = vcombine.low %v5910_v46, %v1856_v1 }
 0x25b   : > { %v1535_v40 = vcombine.low %v1511_v35, %v1527_v36  ;;  %v1837_v50 = vcombine.low %v1818_v44, %v1834_v45  ;;  %v1536_v53 = vcombine.high %v1511_v35, %v1527_v36  ;;  %v1534_v62 = vrot.slane %v1520_v52, %v5930_v15  ;;  %v2516_v52 = vld [vmem:[%s6499_s22] sm:$0x3] }
 0x25c   : > { %v1868_v4 = vcombine.high %v5910_v46, %v1856_v1  ;;  %v1838_v6 = vcombine.high %v1818_v44, %v1834_v45  ;;  %v1875_v55 = vrot.slane %v1867_v2, %v5923_v0  ;;  %v1883_v58 = vcombine.low %v1850_v63, %v1862_v8 }
 0x25d   : > { %v1543_v47 = vpack.c.bf16 %v1535_v40, %v1535_v40  ;;  %v1845_v54 = vpack.c.bf16 %v1837_v50, %v1837_v50  ;;  %v1544_v60 = vpack.c.bf16 %v1536_v53, %v1536_v53  ;;  %v1537_v7 = vcombine.low %v1518_v61, %v1534_v62 }
 0x25e   : > { %v1882_v56 = vrot.slane %v1868_v4, %v5923_v0  ;;  %v1884_v59 = vcombine.high %v1850_v63, %v1862_v8  ;;  %v1846_v46 = vpack.c.bf16 %v1838_v6, %v1838_v6  ;;  %v1891_v9 = vrot.slane %v1883_v58, %v5923_v0 }
 0x25f   : > { %4802 = vmatmul.mubr.msk.bf16.vlgmr.msra.gmra.mxu1 %vm2147_vm1, %v1541_v27  ;;  %v2428_v5 = vsel %vm2147_vm1, %v1845_v54, 0  ;;  %v1545_v11 = vpack.c.bf16 %v1537_v7, %v1537_v7  ;;  %v1538_v17 = vcombine.high %v1518_v61, %v1534_v62  ;;  %v5382_v50 = vmov 1966171168  }
 0x260   : > { %4806 = vmatpush3.bf16.xpose.msra.mxu1 %v2290_v28  ;;  %4807 = vmatprep.mubr.msk.bf16.mxu1 %vm5376_vm0, %v5375_v3  ;;  %v1898_v10 = vrot.slane %v1884_v59, %v5923_v0  ;;  %v1899_v12 = vcombine.low %v1875_v55, %v1891_v9  ;;  %v1900_v13 = vcombine.high %v1875_v55, %v1891_v9  ;;  %v2474_v16 = vsel %vm2147_vm1, %v1846_v46, 0 }
 0x261   : > { %4811 = vmatprep.subr.bf16.mxu1 %v5375_v3  ;;  %v1546_v22 = vpack.c.bf16 %v1538_v17, %v1538_v17  ;;  %v2521_v51 = vunpack.c.l.s4 %v5382_v50  ;;  %vm2517_vm3 = vcmp.gt.f32.partialorder %v2516_v52, 0.0  ;;  %v6083_v1 = vsub.s32 0, %v5920_v57 }
 0x262   : > { %v1915_v42 = vcombine.low %v1882_v56, %v1898_v10  ;;  %v1916_v14 = vcombine.high %v1882_v56, %v1898_v10  ;;  %v1907_v18 = vrot.slane %v1899_v12, %v5930_v15  ;;  %v1914_v19 = vrot.slane %v1900_v13, %v5930_v15 }
 0x263   : > { %v2522_v53 = vunpack.c.0.s8 %v2521_v51 }
 0x264   : > { %v1923_v20 = vrot.slane %v1915_v42, %v5930_v15  ;;  %v1930_v21 = vrot.slane %v1916_v14, %v5930_v15  ;;  %v2003_v23 = vcombine.low %v1907_v18, %v1914_v19  ;;  %v4503_v24 = vcombine.high %v1907_v18, %v1914_v19 }
 0x265   : > { %v2525_v54 = vsub.s32 %v2522_v53, %v5920_v57 }
 0x266   : > { %v2019_v25 = vcombine.low %v1923_v20, %v1930_v21  ;;  %v4504_v26 = vcombine.high %v1923_v20, %v1930_v21  ;;  %v2010_v27 = vrot.slane %v2003_v23, %v5923_v0  ;;  %v2018_v28 = vrot.slane %v4503_v24, %v5923_v0 }
 0x267   : > { %4808 = vmatmul.mubr.msk.bf16.vlgmr.msra.gmra.mxu1 %vm2147_vm1, %v1542_v34 }
 0x268   : > { %4812 = vmatpush3.bf16.xpose.msra.mxu1 %v2336_v37  ;;  %4813 = vmatprep.mubr.msk.bf16.mxu1 %vm5376_vm0, %v5375_v3  ;;  %v2026_v29 = vrot.slane %v2019_v25, %v5923_v0  ;;  %v2034_v30 = vrot.slane %v4504_v26, %v5923_v0  ;;  %v2035_v31 = vcombine.low %v2010_v27, %v2018_v28 }
 0x269   : > { %4817 = vmatprep.subr.bf16.mxu1 %v5375_v3  ;;  %v2036_v33 = vcombine.high %v2010_v27, %v2018_v28 }
 0x26a   : > { %v2051_v32 = vcombine.low %v2026_v29, %v2034_v30  ;;  %v2052_v34 = vcombine.high %v2026_v29, %v2034_v30  ;;  %v2043_v35 = vrot.slane %v2035_v31, %v5930_v15 }
 0x26b   : > { %v2050_v37 = vrot.slane %v2036_v33, %v5930_v15 }
 0x26c   : > { %v2059_v36 = vrot.slane %v2051_v32, %v5930_v15  ;;  %v2066_v38 = vrot.slane %v2052_v34, %v5930_v15 }
 0x26e   : > { %v2067_v43 = vcombine.low %v2043_v35, %v2059_v36  ;;  %v2068_v39 = vcombine.high %v2043_v35, %v2059_v36  ;;  %v6070_v40 = vcombine.low %v2050_v37, %v2066_v38  ;;  %v6072_v41 = vcombine.high %v2050_v37, %v2066_v38 }
 0x26f   : > { %4814 = vmatmul.mubr.msk.bf16.vlgmr.msra.gmra.mxu1 %vm2147_vm1, %v1543_v47 }
 0x270   : > { %4818 = vmatpush3.bf16.xpose.msra.mxu1 %v2382_v48  ;;  %4819 = vmatprep.mubr.msk.bf16.mxu1 %vm5376_vm0, %v5375_v3  ;;  %v2139_v44 = vpack.c.bf16 %v2067_v43, %v2067_v43  ;;  %v2140_v45 = vpack.c.bf16 %v2068_v39, %v2068_v39 }
 0x271   : > { %4823 = vmatprep.subr.bf16.mxu1 %v5375_v3 }
 0x272   : > { %v2646_v47 = vsel %vm2644_vm2, %v2139_v44, 0  ;;  %v2692_v48 = vsel %vm2644_vm2, %v2140_v45, 0 }
 0x273   : > { %4836 = vmatpush3.bf16.msra.mxu0 %v2646_v47 }
 0x274   : > { %4847 = vmatprep.subr.bf16.mxu0 %v5375_v3 }
 0x277   : > { %4820 = vmatmul.mubr.msk.bf16.vlgmr.msra.gmra.mxu1 %vm2147_vm1, %v1544_v60  ;;  %v5383_v60 = vmov -1e+09  }
 0x278   : > { %4824 = vmatpush3.bf16.xpose.msra.mxu1 %v2428_v5  ;;  %4825 = vmatprep.mubr.msk.bf16.mxu1 %vm5376_vm0, %v5375_v3  ;;  %v2518_v61 = vsel %vm2517_vm3, 0.0, %v5383_v60 }
 0x279   : > { %4829 = vmatprep.subr.bf16.mxu1 %v5375_v3  ;;  %v2526_v62 = vrot.slane %v2518_v61, %v2525_v54 }
 0x27b   : > { %v2534_v63 = vrot.slane %v2526_v62, %v2525_v54 }
 0x27d   : > { %v2545_v2 = vrot.slane %v2534_v63, %v6083_v1 }
 0x27f   : > { %4826 = vmatmul.mubr.msk.bf16.vlgmr.msra.gmra.mxu1 %vm2147_vm1, %v1545_v11 }
 0x280   : > { %4830 = vmatpush3.bf16.xpose.msra.mxu1 %v2474_v16  ;;  %4831 = vmatprep.mubr.msk.bf16.mxu1 %vm5376_vm0, %v5375_v3  ;;  %v2527_v16 = vcombine.high %v2526_v62, %v2526_v62 }
 0x281   : > { %4841 = vmatprep.subr.bf16.mxu1 %v5375_v3 }
 0x282   : > { %v2541_v20 = vrot.slane %v2527_v16, %v2525_v54 }
 0x284   : > { %v2549_v24 = vrot.slane %v2541_v20, %v6083_v1 }
 0x287   : > { %4832 = vmatmul.mubr.msk.bf16.vlgmr.msra.gmra.mxu1 %vm2147_vm1, %v1546_v22 }
 0x288   : > { %4843 = vmatprep.mubr.msk.bf16.mxu1 %vm5376_vm0, %v5375_v3  ;;  %4842 = vmatpush3.bf16.msra.mxu1 %v2692_v48 }
 0x289   : > { %4853 = vmatprep.subr.bf16.mxu1 %v5375_v3 }
 0x30f   : > { %v2188_v4 = vpop.f32.mrf.mxu1 }
 0x310   : > { %v6086_v5 = vadd.f32 %v2545_v2, %v2188_v4 }
 0x311   : > { %v4791_v6 = vpop.f32.mrf.mxu1 }
 0x312   : > { %v2561_v7 = vsel %vm2560_vm4, %v6086_v5, -inf }
 0x313   : > { %v2191_v8 = vpop.f32.mrf.mxu1  ;;  %2562 = vmax.xlane.f32.xlu0 %v2561_v7 }
 0x314   : > { %v2141_v8 = vpack.c.bf16 %v6070_v40, %v6070_v40 }
 0x315   : > { %v4792_v55 = vpop.f32.mrf.mxu1 }
 0x317   : > { %v2234_v56 = vpop.f32.mrf.mxu1 }
 0x318   : > { %v2553_v58 = vadd.f32 %v2545_v2, %v2234_v56 }
 0x319   : > { %v4797_v59 = vpop.f32.mrf.mxu1 }
 0x31a   : > { %v2564_v46 = vsel %vm2560_vm4, %v2553_v58, -inf }
 0x31b   : > { %v2237_v9 = vpop.f32.mrf.mxu1  ;;  %2565 = vmax.xlane.f32.xlu1 %v2564_v46 }
 0x31c   : > { %v2142_v9 = vpack.c.bf16 %v6072_v41, %v6072_v41 }
 0x31d   : > { %v4798_v10 = vpop.f32.mrf.mxu1 }
 0x31f   : > { %v2280_v11 = vpop.f32.mrf.mxu1 }
 0x320   : > { %v2554_v12 = vadd.f32 %v2545_v2, %v2280_v11 }
 0x321   : > { %v4803_v13 = vpop.f32.mrf.mxu1 }
 0x322   : > { %v2567_v42 = vsel %vm2560_vm4, %v2554_v12, -inf }
 0x323   : > { %v2283_v14 = vpop.f32.mrf.mxu1  ;;  %2568 = vmax.xlane.f32.xlu1 %v2567_v42  ;;  %v2784_v42 = vsel %vm2644_vm2, %v2142_v9, 0 }
 0x325   : > { %v4804_v17 = vpop.f32.mrf.mxu1 }
 0x327   : > { %v2326_v18 = vpop.f32.mrf.mxu1 }
 0x328   : > { %v6092_v19 = vadd.f32 %v2545_v2, %v2326_v18 }
 0x329   : > { %v4809_v21 = vpop.f32.mrf.mxu1 }
 0x32a   : > { %v2570_v22 = vsel %vm2560_vm4, %v6092_v19, -inf }
 0x32b   : > { %v2329_v23 = vpop.f32.mrf.mxu1  ;;  %2571 = vmax.xlane.f32.xlu0 %v2570_v22 }
 0x32d   : > { %v4810_v25 = vpop.f32.mrf.mxu1 }
 0x32f   : > { %v2372_v26 = vpop.f32.mrf.mxu1 }
 0x330   : > { %v6097_v27 = vadd.f32 %v2549_v24, %v2372_v26 }
 0x331   : > { %v4815_v28 = vpop.f32.mrf.mxu1 }
 0x332   : > { %v2573_v29 = vsel %vm2560_vm4, %v6097_v27, -inf }
 0x333   : > { %v2375_v30 = vpop.f32.mrf.mxu1  ;;  %2574 = vmax.xlane.f32.xlu0 %v2573_v29 }
 0x334   : > { %1857 = vrot.lane.b32.xlu1 %v5918_v49, %s5379_s25 }
 0x335   : > { %v4816_v31 = vpop.f32.mrf.mxu1 }
 0x337   : > { %v2418_v32 = vpop.f32.mrf.mxu1 }
 0x338   : > { %v6107_v50 = vadd.f32 %v2549_v24, %v2418_v32 }
 0x339   : > { %v4821_v33 = vpop.f32.mrf.mxu1 }
 0x33a   : > { %v2576_v51 = vsel %vm2560_vm4, %v6107_v50, -inf }
 0x33b   : > { %v2421_v34 = vpop.f32.mrf.mxu1 }
 0x33d   : > { %v4822_v35 = vpop.f32.mrf.mxu1 }
 0x33f   : > { %v2464_v36 = vpop.f32.mrf.mxu1 }
 0x340   : > { %v6111_v52 = vadd.f32 %v2549_v24, %v2464_v36 }
 0x341   : > { %v4827_v37 = vpop.f32.mrf.mxu1 }
 0x342   : > { %v2579_v53 = vsel %vm2560_vm4, %v6111_v52, -inf }
 0x343   : > { %v2467_v38 = vpop.f32.mrf.mxu1 }
 0x345   : > { %v4828_v43 = vpop.f32.mrf.mxu1 }
 0x347   : > { %v2510_v39 = vpop.f32.mrf.mxu1 }
 0x348   : > { %v6103_v44 = vadd.f32 %v2549_v24, %v2510_v39 }
 0x349   : > { %v4833_v45 = vpop.f32.mrf.mxu1  ;;  %1851 = vrot.lane.b32.xlu0 %v5918_v49, %s5378_s17 }
 0x34a   : > { %v2582_v54 = vsel %vm2560_vm4, %v6103_v44, -inf }
 0x34b   : > { %v2513_v47 = vpop.f32.mrf.mxu1 }
 0x34d   : > { %v4834_v48 = vpop.f32.mrf.mxu1 }
 0x358   : > { %2577 = vmax.xlane.f32.xlu1 %v2576_v51 }
 0x368   : > { %2580 = vmax.xlane.f32.xlu0 %v2579_v53 }
 0x369   : > { %1863 = vrot.lane.b32.xlu1 %v5918_v49, %s5377_s16 }
 0x38d   : > { %2583 = vmax.xlane.f32.xlu1 %v2582_v54 }
 0x39c   : > { %v2563_v60 = vpop.xlane.xlu0 %2562 }
 0x39d   : > { %v2585_v61 = vsub.f32 %v6086_v5, %v2563_v60  ;;  %v2738_v5 = vsel %vm2644_vm2, %v2141_v8, 0 }
 0x39f   : > { %v2593_v62 = vmul.f32 1.442695, %v2585_v61 }
 0x3a1   : > { %5112 = vpow2.f32 %v2593_v62 }
 0x3a4   : > { %v2566_v63 = vpop.xlane.xlu1 %2565 }
 0x3a5   : > { %v2586_v2 = vsub.f32 %v2553_v58, %v2566_v63 }
 0x3a7   : > { %v2595_v4 = vmul.f32 1.442695, %v2586_v2 }
 0x3a9   : > { %5114 = vpow2.f32 %v2595_v4 }
 0x3ac   : > { %v2569_v6 = vpop.xlane.xlu1 %2568 }
 0x3ad   : > { %v2587_v7 = vsub.f32 %v2554_v12, %v2569_v6 }
 0x3ae   : > { %v5113_v55 = vpop.eup %5112 }
 0x3af   : > { %v2597_v56 = vmul.f32 1.442695, %v2587_v7  ;;  %v2609_v59 = vsel %vm2560_vm4, %v5113_v55, 0.0  ;;  %v2633_v46 = vpack.c.bf16 %v5113_v55, %v5113_v55 }
 0x3b0   : > { %2610 = vadd.xlane.f32.xlu0 %v2609_v59  ;;  %v1858_v25 = vpop.permute.xlu1 %1857 }
 0x3b1   : > { %5116 = vpow2.f32 %v2597_v56  ;;  %4838 = vmatmul.mubr.msk.bf16.vlgmr.msra.gmra.mxu0 %vm2560_vm4, %v2633_v46  ;;  %v1935_v28 = vcombine.low %v5918_v49, %v1858_v25  ;;  %v1936_v29 = vcombine.high %v5918_v49, %v1858_v25 }
 0x3b2   : > { %4848 = vmatpush3.bf16.msra.mxu0 %v2738_v5  ;;  %4849 = vmatprep.mubr.msk.bf16.mxu0 %vm5376_vm0, %v5375_v3 }
 0x3b3   : > { %4859 = vmatprep.subr.bf16.mxu0 %v5375_v3  ;;  %v1943_v35 = vrot.slane %v1935_v28, %v5923_v0  ;;  %v1950_v36 = vrot.slane %v1936_v29, %v5923_v0 }
 0x3b4   : > { %v2572_v58 = vpop.xlane.xlu0 %2571 }
 0x3b5   : > { %v2588_v40 = vsub.f32 %v6092_v19, %v2572_v58 }
 0x3b6   : > { %v5115_v10 = vpop.eup %5114 }
 0x3b7   : > { %v2599_v11 = vmul.f32 1.442695, %v2588_v40  ;;  %v2612_v12 = vsel %vm2560_vm4, %v5115_v10, 0.0  ;;  %v2634_v13 = vpack.c.bf16 %v5115_v10, %v5115_v10 }
 0x3b8   : > { %2613 = vadd.xlane.f32.xlu0 %v2612_v12 }
 0x3b9   : > { %5118 = vpow2.f32 %v2599_v11  ;;  %4844 = vmatmul.mubr.msk.bf16.vlgmr.msra.gmra.mxu1 %vm2560_vm4, %v2634_v13 }
 0x3ba   : > { %4854 = vmatpush3.bf16.msra.mxu1 %v2784_v42  ;;  %4855 = vmatprep.mubr.msk.bf16.mxu1 %vm5376_vm0, %v5375_v3 }
 0x3bb   : > { %4865 = vmatprep.subr.bf16.mxu1 %v5375_v3 }
 0x3bc   : > { %v2575_v14 = vpop.xlane.xlu0 %2574 }
 0x3bd   : > { %v2589_v41 = vsub.f32 %v6097_v27, %v2575_v14 }
 0x3be   : > { %v5117_v16 = vpop.eup %5116 }
 0x3bf   : > { %v2601_v17 = vmul.f32 1.442695, %v2589_v41  ;;  %v2615_v18 = vsel %vm2560_vm4, %v5117_v16, 0.0  ;;  %v2635_v19 = vpack.c.bf16 %v5117_v16, %v5117_v16 }
 0x3c0   : > { %2616 = vadd.xlane.f32.xlu1 %v2615_v18  ;;  %v1852_v31 = vpop.permute.xlu0 %1851 }
 0x3c1   : > { %5120 = vpow2.f32 %v2601_v17  ;;  %4850 = vmatmul.mubr.msk.bf16.vlgmr.msra.gmra.mxu0 %vm2560_vm4, %v2635_v19 }
 0x3c2   : > { %4861 = vmatprep.mubr.msk.bf16.mxu0 %vm5376_vm0, %v5375_v3 }
 0x3c6   : > { %v5119_v20 = vpop.eup %5118 }
 0x3c7   : > { %v2618_v21 = vsel %vm2560_vm4, %v5119_v20, 0.0  ;;  %v2636_v22 = vpack.c.bf16 %v5119_v20, %v5119_v20 }
 0x3c8   : > { %2619 = vadd.xlane.f32.xlu0 %v2618_v21 }
 0x3c9   : > { %4856 = vmatmul.mubr.msk.bf16.vlgmr.msra.gmra.mxu1 %vm2560_vm4, %v2636_v22 }
 0x3ca   : > { %4867 = vmatprep.mubr.msk.bf16.mxu1 %vm5376_vm0, %v5375_v3 }
 0x3ce   : > { %v6146_v23 = vpop.eup %5120 }
 0x3cf   : > { %v2621_v24 = vsel %vm2560_vm4, %v6146_v23, 0.0  ;;  %v2637_v20 = vpack.c.bf16 %v6146_v23, %v6146_v23 }
 0x3d0   : > { %2622 = vadd.xlane.f32.xlu1 %v2621_v24 }
 0x3e1   : > { %v2578_v26 = vpop.xlane.xlu1 %2577 }
 0x3e2   : > { %v2590_v27 = vsub.f32 %v6107_v50, %v2578_v26 }
 0x3e4   : > { %v2603_v30 = vmul.f32 1.442695, %v2590_v27 }
 0x3e5   : > { %v1864_v32 = vpop.permute.xlu1 %1863 }
 0x3e6   : > { %5122 = vpow2.f32 %v2603_v30  ;;  %v1951_v33 = vcombine.low %v1852_v31, %v1864_v32  ;;  %v1952_v34 = vcombine.high %v1852_v31, %v1864_v32 }
 0x3e8   : > { %v1959_v37 = vrot.slane %v1951_v33, %v5923_v0  ;;  %v1966_v38 = vrot.slane %v1952_v34, %v5923_v0 }
 0x3ea   : > { %v1967_v43 = vcombine.low %v1943_v35, %v1959_v37  ;;  %v1968_v39 = vcombine.high %v1943_v35, %v1959_v37  ;;  %v1983_v45 = vcombine.low %v1950_v36, %v1966_v38  ;;  %v1984_v47 = vcombine.high %v1950_v36, %v1966_v38 }
 0x3ec   : > { %v1975_v49 = vrot.slane %v1967_v43, %v5930_v15  ;;  %v1982_v48 = vrot.slane %v1968_v39, %v5930_v15  ;;  %v1991_v50 = vrot.slane %v1983_v45, %v5930_v15  ;;  %v1998_v51 = vrot.slane %v1984_v47, %v5930_v15 }
 0x3ee   : > { %v2071_v53 = vcombine.low %v1975_v49, %v1982_v48  ;;  %v4505_v54 = vcombine.high %v1975_v49, %v1982_v48  ;;  %v2087_v60 = vcombine.low %v1991_v50, %v1998_v51  ;;  %v4506_v61 = vcombine.high %v1991_v50, %v1998_v51 }
 0x3f0   : > { %v2078_v62 = vrot.slane %v2071_v53, %v5923_v0  ;;  %v2086_v63 = vrot.slane %v4505_v54, %v5923_v0  ;;  %v2094_v2 = vrot.slane %v2087_v60, %v5923_v0  ;;  %v2102_v4 = vrot.slane %v4506_v61, %v5923_v0 }
 0x3f1   : > { %v2581_v6 = vpop.xlane.xlu0 %2580 }
 0x3f2   : > { %v2591_v7 = vsub.f32 %v6111_v52, %v2581_v6  ;;  %v2103_v8 = vcombine.low %v2078_v62, %v2086_v63  ;;  %v2119_v55 = vcombine.low %v2094_v2, %v2102_v4  ;;  %v2104_v56 = vcombine.high %v2078_v62, %v2086_v63 }
 0x3f3   : > { %v5123_v59 = vpop.eup %5122  ;;  %v2120_v46 = vcombine.high %v2094_v2, %v2102_v4  ;;  %v5024_v2 = vld [vmem:[%s5744_s1 + $0x38] sm:$0xff]  }
 0x3f4   : > { %v2605_v5 = vmul.f32 1.442695, %v2591_v7  ;;  %v2624_v58 = vsel %vm2560_vm4, %v5123_v59, 0.0  ;;  %v2111_v40 = vrot.slane %v2103_v8, %v5930_v15  ;;  %v2127_v9 = vrot.slane %v2119_v55, %v5930_v15  ;;  %v5025_v7 = vld [vmem:[%s5744_s1 + $0x30] sm:$0xff]  }
 0x3f5   : > { %2625 = vadd.xlane.f32.xlu0 %v2624_v58  ;;  %v2118_v10 = vrot.slane %v2104_v56, %v5930_v15  ;;  %v2134_v11 = vrot.slane %v2120_v46, %v5930_v15  ;;  %v2638_v21 = vpack.c.bf16 %v5123_v59, %v5123_v59 }
 0x3f6   : > { %5124 = vpow2.f32 %v2605_v5  ;;  %v2135_v12 = vcombine.low %v2111_v40, %v2127_v9  ;;  %v2136_v52 = vcombine.high %v2111_v40, %v2127_v9  ;;  %v5026_v40 = vld [vmem:[%s5744_s1 + $0x28] sm:$0xff]  }
 0x3f7   : > { %v2137_v13 = vcombine.low %v2118_v10, %v2134_v11  ;;  %v2138_v42 = vcombine.high %v2118_v10, %v2134_v11 }
 0x3f8   : > { %v2143_v14 = vpack.c.bf16 %v2135_v12, %v2135_v12  ;;  %v2144_v41 = vpack.c.bf16 %v2136_v52, %v2136_v52 }
 0x3f9   : > { %v2145_v18 = vpack.c.bf16 %v2137_v13, %v2137_v13  ;;  %v2146_v19 = vpack.c.bf16 %v2138_v42, %v2138_v42 }
 0x3fa   : > { %v2830_v16 = vsel %vm2644_vm2, %v2143_v14, 0  ;;  %v2876_v17 = vsel %vm2644_vm2, %v2144_v41, 0 }
 0x3fb   : > { %4860 = vmatpush3.bf16.msra.mxu0 %v2830_v16  ;;  %4866 = vmatpush3.bf16.msra.mxu1 %v2876_v17  ;;  %v2922_v22 = vsel %vm2644_vm2, %v2145_v18, 0  ;;  %v2968_v24 = vsel %vm2644_vm2, %v2146_v19, 0  ;;  %v5027_v17 = vld [vmem:[%s5744_s1 + $0x20] sm:$0xff]  }
 0x3fc   : > { %4871 = vmatprep.subr.bf16.mxu0 %v5375_v3  ;;  %4877 = vmatprep.subr.bf16.mxu1 %v5375_v3 }
 0x3fe   : > { %4862 = vmatmul.mubr.msk.bf16.vlgmr.msra.gmra.mxu0 %vm2560_vm4, %v2637_v20  ;;  %4868 = vmatmul.mubr.msk.bf16.vlgmr.msra.gmra.mxu1 %vm2560_vm4, %v2638_v21 }
 0x3ff   : > { %4872 = vmatpush3.bf16.msra.mxu0 %v2922_v22  ;;  %4878 = vmatpush3.bf16.msra.mxu1 %v2968_v24 }
 0x400   : > { %4873 = vmatprep.mubr.msk.bf16.mxu0 %vm5376_vm0, %v5375_v3  ;;  %4879 = vmatprep.mubr.msk.bf16.mxu1 %vm5376_vm0, %v5375_v3 }
 0x401   : > { %4883 = vmatprep.subr.bf16.mxu0 %v5375_v3 }
 0x403   : > { %v5125_v23 = vpop.eup %5124 }
 0x404   : > { %v2627_v25 = vsel %vm2560_vm4, %v5125_v23, 0.0  ;;  %v2639_v26 = vpack.c.bf16 %v5125_v23, %v5125_v23 }
 0x405   : > { %2628 = vadd.xlane.f32.xlu1 %v2627_v25 }
 0x406   : > { %4874 = vmatmul.mubr.msk.bf16.vlgmr.msra.gmra.mxu0 %vm2560_vm4, %v2639_v26  ;;  %v5028_v26 = vld [vmem:[%s5744_s1 + $0x18] sm:$0xff]  }
 0x407   : > { %4899 = vmatprep.mubr.msk.bf16.mxu0 %vm5376_vm0, %v5375_v3  ;;  %4884 = vmatpush3.bf16.msra.mxu0 %v5024_v2 }
 0x408   : > { %4885 = vmatprep.subr.bf16.mxu0 %v5375_v3 }
 0x40b   : > { %4886 = vmatpush3.bf16.msra.mxu0 %v5025_v7 }
 0x40c   : > { %4887 = vmatprep.subr.bf16.mxu0 %v5375_v3 }
 0x40f   : > { %4888 = vmatpush3.bf16.msra.mxu0 %v5026_v40 }
 0x410   : > { %4889 = vmatprep.subr.bf16.mxu0 %v5375_v3 }
 0x413   : > { %4890 = vmatpush3.bf16.msra.mxu0 %v5027_v17 }
 0x414   : > { %4891 = vmatprep.subr.bf16.mxu0 %v5375_v3 }
 0x416   : > { %v2584_v27 = vpop.xlane.xlu1 %2583 }
 0x417   : > { %v2592_v28 = vsub.f32 %v6103_v44, %v2584_v27  ;;  %4892 = vmatpush3.bf16.msra.mxu0 %v5028_v26 }
 0x418   : > { %4893 = vmatprep.subr.bf16.mxu0 %v5375_v3 }
 0x419   : > { %v2607_v29 = vmul.f32 1.442695, %v2592_v28 }
 0x41b   : > { %5126 = vpow2.f32 %v2607_v29 }
 0x428   : > { %v5127_v30 = vpop.eup %5126 }
 0x429   : > { %v2630_v31 = vsel %vm2560_vm4, %v5127_v30, 0.0  ;;  %v2640_v32 = vpack.c.bf16 %v5127_v30, %v5127_v30 }
 0x42a   : > { %2631 = vadd.xlane.f32.xlu0 %v2630_v31 }
 0x42b   : > { %4880 = vmatmul.mubr.msk.bf16.vlgmr.msra.gmra.mxu1 %vm2560_vm4, %v2640_v32 }
 0x439   : > { %v2611_v33 = vpop.xlane.xlu0 %2610 }
 0x43a   : > { %5128 = vrcp.f32 %v2611_v33 }
 0x441   : > { %v2614_v37 = vpop.xlane.xlu0 %2613 }
 0x447   : > { %v5129_v48 = vpop.eup %5128 }
 0x449   : > { %v2617_v34 = vpop.xlane.xlu1 %2616 }
 0x44a   : > { %5130 = vrcp.f32 %v2617_v34 }
 0x44b   : > { %5132 = vrcp.f32 %v2614_v37 }
 0x451   : > { %v2620_v39 = vpop.xlane.xlu0 %2619 }
 0x452   : > { %5134 = vrcp.f32 %v2620_v39 }
 0x457   : > { %v5131_v50 = vpop.eup %5130 }
 0x458   : > { %v5133_v6 = vpop.eup %5132 }
 0x45f   : > { %v5135_v8 = vpop.eup %5134 }
 0x471   : > { %v2682_v35 = vpop.f32.mrf.mxu0 }
 0x472   : > { %v3018_v53 = vmul.f32 %v5129_v48, %v2682_v35  ;;  %v5029_v35 = vld [vmem:[%s5744_s1 + $0x10] sm:$0xff]  }
 0x473   : > { %v4839_v36 = vpop.f32.mrf.mxu0  ;;  %4894 = vmatpush3.bf16.msra.mxu0 %v5029_v35 }
 0x474   : > { %4895 = vmatprep.subr.bf16.mxu0 %v5375_v3 }
 0x475   : > { %v2685_v38 = vpop.f32.mrf.mxu0 }
 0x477   : > { %v4840_v43 = vpop.f32.mrf.mxu0 }
 0x479   : > { %v2728_v44 = vpop.f32.mrf.mxu1 }
 0x47a   : > { %v3019_v56 = vmul.f32 %v5133_v6, %v2728_v44  ;;  %v2623_v6 = vpop.xlane.xlu1 %2622 }
 0x47b   : > { %v4845_v45 = vpop.f32.mrf.mxu1 }
 0x47d   : > { %v2731_v47 = vpop.f32.mrf.mxu1 }
 0x47e   : > { %v2626_v7 = vpop.xlane.xlu0 %2625 }
 0x47f   : > { %v4846_v49 = vpop.f32.mrf.mxu1 }
 0x481   : > { %v2774_v51 = vpop.f32.mrf.mxu0 }
 0x482   : > { %v3020_v54 = vmul.f32 %v5131_v50, %v2774_v51 }
 0x483   : > { %v4851_v60 = vpop.f32.mrf.mxu0 }
 0x484   : > { %v3026_v61 = vcombine.low %v3018_v53, %v3020_v54  ;;  %v3027_v62 = vcombine.high %v3018_v53, %v3020_v54 }
 0x485   : > { %v2777_v63 = vpop.f32.mrf.mxu0 }
 0x486   : > { %v3034_v10 = vrot.slane %v3026_v61, %v5923_v0  ;;  %v3041_v11 = vrot.slane %v3027_v62, %v5923_v0 }
 0x487   : > { %v4852_v4 = vpop.f32.mrf.mxu0 }
 0x489   : > { %v2820_v55 = vpop.f32.mrf.mxu1 }
 0x48a   : > { %v3021_v59 = vmul.f32 %v5135_v8, %v2820_v55 }
 0x48b   : > { %v4857_v46 = vpop.f32.mrf.mxu1 }
 0x48c   : > { %v3042_v5 = vcombine.low %v3019_v56, %v3021_v59  ;;  %v3043_v58 = vcombine.high %v3019_v56, %v3021_v59 }
 0x48d   : > { %v2823_v9 = vpop.f32.mrf.mxu1 }
 0x48e   : > { %v3050_v12 = vrot.slane %v3042_v5, %v5923_v0  ;;  %v3057_v52 = vrot.slane %v3043_v58, %v5923_v0  ;;  %v2629_v8 = vpop.xlane.xlu1 %2628 }
 0x48f   : > { %v4858_v13 = vpop.f32.mrf.mxu1  ;;  %5136 = vrcp.f32 %v2629_v8 }
 0x490   : > { %v3058_v42 = vcombine.low %v3034_v10, %v3050_v12  ;;  %v3059_v14 = vcombine.high %v3034_v10, %v3050_v12  ;;  %v3074_v41 = vcombine.low %v3041_v11, %v3057_v52  ;;  %v3075_v16 = vcombine.high %v3041_v11, %v3057_v52 }
 0x491   : > { %5138 = vrcp.f32 %v2623_v6 }
 0x492   : > { %v3066_v18 = vrot.slane %v3058_v42, %v5930_v15  ;;  %v3073_v19 = vrot.slane %v3059_v14, %v5930_v15  ;;  %v3082_v20 = vrot.slane %v3074_v41, %v5930_v15  ;;  %v3089_v21 = vrot.slane %v3075_v16, %v5930_v15 }
 0x493   : > { %5140 = vrcp.f32 %v2626_v7 }
 0x494   : > { %v3162_v22 = vcombine.low %v3066_v18, %v3073_v19  ;;  %v4523_v24 = vcombine.high %v3066_v18, %v3073_v19  ;;  %v3178_v23 = vcombine.low %v3082_v20, %v3089_v21  ;;  %v4524_v25 = vcombine.high %v3082_v20, %v3089_v21 }
 0x496   : > { %v3169_v27 = vrot.slane %v3162_v22, %v5923_v0  ;;  %v3177_v28 = vrot.slane %v4523_v24, %v5923_v0  ;;  %v3185_v29 = vrot.slane %v3178_v23, %v5923_v0  ;;  %v3193_v30 = vrot.slane %v4524_v25, %v5923_v0 }
 0x498   : > { %v3195_v31 = vcombine.high %v3169_v27, %v3177_v28  ;;  %v3211_v32 = vcombine.high %v3185_v29, %v3193_v30  ;;  %v3194_v33 = vcombine.low %v3169_v27, %v3177_v28  ;;  %v3210_v34 = vcombine.low %v3185_v29, %v3193_v30 }
 0x49a   : > { %v6217_v36 = vrot.slane %v3195_v31, %v5930_v15  ;;  %v6220_v37 = vrot.slane %v3211_v32, %v5930_v15  ;;  %v6223_v38 = vrot.slane %v3194_v33, %v5930_v15  ;;  %v6226_v43 = vrot.slane %v3210_v34, %v5930_v15  ;;  %v5030_v33 = vld [vmem:[%s5744_s1 + $0x8] sm:$0xff]  }
 0x49b   : > { %4896 = vmatpush3.bf16.msra.mxu0 %v5030_v33 }
 0x49c   : > { %v3228_v39 = vcombine.low %v6217_v36, %v6220_v37  ;;  %v3226_v44 = vcombine.low %v6223_v38, %v6226_v43  ;;  %v3227_v45 = vcombine.high %v6223_v38, %v6226_v43  ;;  %v3229_v47 = vcombine.high %v6217_v36, %v6220_v37  ;;  %v5137_v56 = vpop.eup %5136  ;;  %4897 = vmatprep.subr.bf16.mxu0 %v5375_v3  ;;  %v4527_v38 = vld [vmem:[%s6502_s4] ss:$0 sm:$0xff] }
 0x49e   : > { %v5139_v46 = vpop.eup %5138 }
 0x4a0   : > { %v5141_v5 = vpop.eup %5140 }
 0x4b3   : > { %v2632_v55 = vpop.xlane.xlu0 %2631 }
 0x4b4   : > { %5142 = vrcp.f32 %v2632_v55 }
 0x4be   : > { %v2866_v49 = vpop.f32.mrf.mxu0  ;;  %v2912_v48 = vpop.f32.mrf.mxu1 }
 0x4bf   : > { %v3022_v58 = vmul.f32 %v5139_v46, %v2866_v49  ;;  %v3023_v10 = vmul.f32 %v5141_v5, %v2912_v48 }
 0x4c0   : > { %v4863_v50 = vpop.f32.mrf.mxu0  ;;  %v4869_v51 = vpop.f32.mrf.mxu1 }
 0x4c1   : > { %v5143_v40 = vpop.eup %5142 }
 0x4c2   : > { %v2869_v53 = vpop.f32.mrf.mxu0  ;;  %v2915_v54 = vpop.f32.mrf.mxu1 }
 0x4c4   : > { %v4864_v60 = vpop.f32.mrf.mxu0  ;;  %v4870_v61 = vpop.f32.mrf.mxu1 }
 0x4c6   : > { %v2958_v62 = vpop.f32.mrf.mxu0 }
 0x4c7   : > { %v3024_v59 = vmul.f32 %v5137_v56, %v2958_v62 }
 0x4c8   : > { %v4875_v63 = vpop.f32.mrf.mxu0 }
 0x4c9   : > { %v3094_v11 = vcombine.low %v3022_v58, %v3024_v59  ;;  %v3095_v12 = vcombine.high %v3022_v58, %v3024_v59 }
 0x4ca   : > { %v2961_v2 = vpop.f32.mrf.mxu0 }
 0x4cb   : > { %v3102_v16 = vrot.slane %v3094_v11, %v5923_v0  ;;  %v3109_v17 = vrot.slane %v3095_v12, %v5923_v0  ;;  %v5031_v2 = vld [vmem:[%s5744_s1] sm:$0xff]   ;;  %s6500_s1 = sld [smem:[#allocation21_spill]] }
 0x4cc   : > { %v4876_v4 = vpop.f32.mrf.mxu0  ;;  %4898 = vmatpush3.bf16.msra.mxu0 %v5031_v2 }
 0x4d1   : > { %v5041_v33 = vld [vmem:[%s6500_s1 + $0xc8] ss:$16 sps:$4 sm:$0xff]  }
 0x4d2   : > { %v5059_v2 = vld [vmem:[%s6500_s1 + $0x68] ss:$16 sps:$4 sm:$0xff]  }
 0x4eb   : > { %v3004_v9 = vpop.f32.mrf.mxu1 }
 0x4ec   : > { %v3025_v52 = vmul.f32 %v5143_v40, %v3004_v9 }
 0x4ed   : > { %v4881_v13 = vpop.f32.mrf.mxu1 }
 0x4ee   : > { %v3110_v42 = vcombine.low %v3023_v10, %v3025_v52  ;;  %v3111_v14 = vcombine.high %v3023_v10, %v3025_v52  ;;  %v5152_v13 = vld [vmem:[#allocation2] sm:$0xff] }
 0x4ef   : > { %v3007_v41 = vpop.f32.mrf.mxu1 }
 0x4f0   : > { %v3118_v18 = vrot.slane %v3110_v42, %v5923_v0  ;;  %v3125_v19 = vrot.slane %v3111_v14, %v5923_v0 }
 0x4f1   : > { %v4882_v20 = vpop.f32.mrf.mxu1 }
 0x4f2   : > { %v3126_v21 = vcombine.low %v3102_v16, %v3118_v18  ;;  %v3127_v22 = vcombine.high %v3102_v16, %v3118_v18  ;;  %v3142_v24 = vcombine.low %v3109_v17, %v3125_v19  ;;  %v3143_v23 = vcombine.high %v3109_v17, %v3125_v19  ;;  %v5153_v17 = vld [vmem:[#allocation2 + $0x8] sm:$0xff]  ;;  %v5032_v19 = vld [vmem:[%s6500_s1 + $0xe0] ss:$16 sps:$4 sm:$0xff]   ;;  %v5034_v20 = vld [vmem:[%s6500_s1 + $0xe4] ss:$16 sps:$4 sm:$0xff]  }
 0x4f3   : > { %3701 = vmatprep.subr.bf16.mxu1 %v5034_v20  ;;  %v5085_v20 = vld [vmem:[%s5804_s14 + $0xf0] sm:$0xff]  }
 0x4f4   : > { %v3134_v25 = vrot.slane %v3126_v21, %v5930_v15  ;;  %v3141_v26 = vrot.slane %v3127_v22, %v5930_v15  ;;  %v3150_v27 = vrot.slane %v3142_v24, %v5930_v15  ;;  %v3157_v28 = vrot.slane %v3143_v23, %v5930_v15  ;;  %v5035_v21 = vld [vmem:[%s6500_s1 + $0xe8] ss:$16 sps:$4 sm:$0xff]   ;;  %v5037_v22 = vld [vmem:[%s6500_s1 + $0xec] ss:$16 sps:$4 sm:$0xff]   ;;  %3702 = vmatpush1.bf16.msra.mxu1 %v5032_v19  ;;  %v5084_v19 = vld [vmem:[%s5804_s14 + $0x70] sm:$0xff]  }
 0x4f5   : > { %3744 = vmatprep.subr.bf16.mxu0 %v5037_v22  ;;  %v5087_v22 = vld [vmem:[%s5804_s14 + $0xb0] sm:$0xff]  }
 0x4f6   : > { %v3230_v29 = vcombine.low %v3134_v25, %v3141_v26  ;;  %v4525_v30 = vcombine.high %v3134_v25, %v3141_v26  ;;  %v3246_v31 = vcombine.low %v3150_v27, %v3157_v28  ;;  %v4526_v32 = vcombine.high %v3150_v27, %v3157_v28 }
 0x4f8   : > { %v3237_v34 = vrot.slane %v3230_v29, %v5923_v0  ;;  %v3245_v35 = vrot.slane %v4525_v30, %v5923_v0  ;;  %v3253_v49 = vrot.slane %v3246_v31, %v5923_v0  ;;  %v3261_v48 = vrot.slane %v4526_v32, %v5923_v0  ;;  %v5038_v31 = vld [vmem:[%s6500_s1 + $0xc0] ss:$16 sps:$4 sm:$0xff]   ;;  %v5040_v32 = vld [vmem:[%s6500_s1 + $0xc4] ss:$16 sps:$4 sm:$0xff]  }
 0x4f9   : > { %3703 = vmatprep.subr.bf16.mxu1 %v5040_v32  ;;  %v5097_v32 = vld [vmem:[%s5804_s14 + $0xd8] sm:$0xff]  }
 0x4fa   : > { %v3263_v50 = vcombine.high %v3237_v34, %v3245_v35  ;;  %v3279_v51 = vcombine.high %v3253_v49, %v3261_v48  ;;  %v3262_v53 = vcombine.low %v3237_v34, %v3245_v35  ;;  %v3278_v54 = vcombine.low %v3253_v49, %v3261_v48  ;;  %v5043_v34 = vld [vmem:[%s6500_s1 + $0xcc] ss:$16 sps:$4 sm:$0xff]   ;;  %3704 = vmatpush1.bf16.msra.mxu1 %v5038_v31  ;;  %v5044_v35 = vld [vmem:[%s6500_s1 + $0xa0] ss:$16 sps:$4 sm:$0xff]   ;;  %v5046_v49 = vld [vmem:[%s6500_s1 + $0xa4] ss:$16 sps:$4 sm:$0xff]  }
 0x4fb   : > { %v5047_v48 = vld [vmem:[%s6500_s1 + $0xa8] ss:$16 sps:$4 sm:$0xff]   ;;  %3705 = vmatprep.subr.bf16.mxu1 %v5046_v49  ;;  %v5101_v49 = vld [vmem:[%s5804_s14 + $0xd0] sm:$0xff]  }
 0x4fc   : > { %v3277_v60 = vrot.slane %v3263_v50, %v5930_v15  ;;  %v3293_v61 = vrot.slane %v3279_v51, %v5930_v15  ;;  %v3270_v62 = vrot.slane %v3262_v53, %v5930_v15  ;;  %v3286_v63 = vrot.slane %v3278_v54, %v5930_v15  ;;  %v5049_v50 = vld [vmem:[%s6500_s1 + $0xac] ss:$16 sps:$4 sm:$0xff]   ;;  %v5052_v51 = vld [vmem:[%s6500_s1 + $0x84] ss:$16 sps:$4 sm:$0xff]   ;;  %v5050_v54 = vld [vmem:[%s6500_s1 + $0x80] ss:$16 sps:$4 sm:$0xff]  }
 0x4fd   : > { %v5055_v53 = vld [vmem:[%s6500_s1 + $0x8c] ss:$16 sps:$4 sm:$0xff]  }
 0x4fe   : > { %v3296_v4 = vcombine.low %v3277_v60, %v3293_v61  ;;  %v3295_v6 = vcombine.high %v3270_v62, %v3286_v63  ;;  %v3294_v7 = vcombine.low %v3270_v62, %v3286_v63  ;;  %v3297_v8 = vcombine.high %v3277_v60, %v3293_v61  ;;  %3706 = vmatpush1.bf16.msra.mxu1 %v5044_v35  ;;  %v5053_v60 = vld [vmem:[%s6500_s1 + $0x88] ss:$16 sps:$4 sm:$0xff]   ;;  %v5058_v61 = vld [vmem:[%s6500_s1 + $0x64] ss:$16 sps:$4 sm:$0xff]   ;;  %v5061_v62 = vld [vmem:[%s6500_s1 + $0x6c] ss:$16 sps:$4 sm:$0xff]  }
 0x4ff   : > { %3707 = vmatprep.subr.bf16.mxu1 %v5052_v51  ;;  %v5056_v63 = vld [vmem:[%s6500_s1 + $0x60] ss:$16 sps:$4 sm:$0xff]   ;;  %v5096_v31 = vld [vmem:[%s5804_s14 + $0x58] sm:$0xff]   ;;  %v5104_v51 = vld [vmem:[%s5804_s14 + $0x48] sm:$0xff]  }
 0x500   : > { %v4990_v0 = vpack.i.bf16 %v3296_v4, %v3228_v39  ;;  %v4985_v3 = vpack.i.bf16 %v3295_v6, %v3227_v45  ;;  %v4995_v15 = vpack.i.bf16 %v3297_v8, %v3229_v47  ;;  %v5064_v4 = vld [vmem:[%s6500_s1 + $0x44] ss:$16 sps:$4 sm:$0xff]   ;;  %v5067_v6 = vld [vmem:[%s6500_s1 + $0x4c] ss:$16 sps:$4 sm:$0xff]  }
 0x501   : > { %v5070_v8 = vld [vmem:[%s6500_s1 + $0x24] ss:$16 sps:$4 sm:$0xff]  }
 0x502   : > { %4991 = vrot.lane.b32.xlu0 %v4990_v0, %s5379_s25  ;;  %4986 = vrot.lane.b32.xlu1 %v4985_v3, %s5377_s16  ;;  %v5062_v0 = vld [vmem:[%s6500_s1 + $0x40] ss:$16 sps:$4 sm:$0xff]   ;;  %v5065_v3 = vld [vmem:[%s6500_s1 + $0x48] ss:$16 sps:$4 sm:$0xff]  }
 0x503   : > { %3708 = vmatpush1.bf16.msra.mxu1 %v5050_v54  ;;  %v5100_v35 = vld [vmem:[%s5804_s14 + $0x50] sm:$0xff]   ;;  %v5106_v54 = vld [vmem:[%s5804_s14 + $0x8] sm:$0xff]  }
 0x504   : > { %3709 = vmatprep.subr.bf16.mxu1 %v5058_v61  ;;  %v5108_v61 = vld [vmem:[%s5804_s14 + $0x40] sm:$0xff]  }
 0x506   : > { %4996 = vrot.lane.b32.xlu1 %v4995_v15, %s5378_s17  ;;  %v5073_v15 = vld [vmem:[%s6500_s1 + $0x2c] ss:$16 sps:$4 sm:$0xff]  }
 0x507   : > { %3710 = vmatpush1.bf16.msra.mxu1 %v5056_v63  ;;  %v5110_v63 = vld [vmem:[%s5804_s14] sm:$0xff]  }
 0x508   : > { %3711 = vmatprep.subr.bf16.mxu1 %v5064_v4  ;;  %v3527_v4 = vsub.s32 1, %v5920_v57 }
 0x50b   : > { %3712 = vmatpush1.bf16.msra.mxu1 %v5062_v0  ;;  %v3519_v0 = vld [vmem:[%s5794_s29] sm:$0xf] }
 0x50c   : > { %3713 = vmatprep.subr.bf16.mxu1 %v5070_v8 }
 0x574   : > { %v4992_v55 = vpop.permute.xlu0 %4991  ;;  %v4987_v56 = vpop.permute.xlu1 %4986 }
 0x575   : > { %v4989_v59 = vunpack.i.h.bf16 %v4987_v56  ;;  %v4988_v46 = vunpack.i.l.bf16 %v4987_v56  ;;  %v4994_v39 = vunpack.i.h.bf16 %v4992_v55  ;;  %v4993_v5 = vunpack.i.l.bf16 %v4992_v55  ;;  %v5068_v55 = vld [vmem:[%s6500_s1 + $0x20] ss:$16 sps:$4 sm:$0xff]   ;;  %v5071_v56 = vld [vmem:[%s6500_s1 + $0x28] ss:$16 sps:$4 sm:$0xff]  }
 0x576   : > { %3714 = vmatpush1.bf16.msra.mxu1 %v5068_v55 }
 0x577   : > { %v3322_v45 = vsel %vm2147_vm1, %v3226_v44, %v4988_v46  ;;  %v3323_v58 = vsel %vm2147_vm1, %v3294_v7, %v4989_v59  ;;  %v5384_v7 = vmov 0   ;;  %v5076_v59 = vld [vmem:[%s6500_s1 + $0x4] ss:$16 sps:$4 sm:$0xff]   ;;  %v5079_v46 = vld [vmem:[%s6500_s1 + $0xc] ss:$16 sps:$4 sm:$0xff]  }
 0x578   : > { %v4997_v36 = vpop.permute.xlu1 %4996  ;;  %v3325_v40 = vsel %vm3324_vm5, %v3322_v45, %v4993_v5  ;;  %v3326_v9 = vsel %vm3324_vm5, %v3323_v58, %v4994_v39  ;;  %3733 = vmatprep.mubr.bf16.mxu1 %v5384_v7  ;;  %v5074_v39 = vld [vmem:[%s6500_s1] ss:$16 sps:$4 sm:$0xff]   ;;  %3715 = vmatprep.subr.bf16.mxu1 %v5076_v59  ;;  %v5077_v5 = vld [vmem:[%s6500_s1 + $0x8] ss:$16 sps:$4 sm:$0xff]  }
 0x579   : > { %v4999_v37 = vunpack.i.h.bf16 %v4997_v36  ;;  %v4998_v47 = vunpack.i.l.bf16 %v4997_v36  ;;  %v5080_v45 = vld [vmem:[%s5804_s14 + $0x78] sm:$0xff]  }
 0x57a   : > { %v5081_v58 = vld [vmem:[%s5804_s14 + $0xf8] sm:$0xff]   ;;  %3716 = vmatpush1.bf16.msra.mxu1 %v5074_v39 }
 0x57b   : > { %v3328_v10 = vsel %vm3327_vm6, %v3325_v40, %v4998_v47  ;;  %v3329_v11 = vsel %vm3327_vm6, %v3326_v9, %v4999_v37  ;;  %4683 = vmatprep.subr.bf16.mxu1 %v5080_v45 }
 0x57c   : > { %v3330_v12 = vpack.c.bf16 %v3329_v11, %v3328_v10 }
 0x57e   : > { %4900 = vmatmul.mubr.bf16.vlgmr.msra.gmra.mxu0 %v3330_v12 }
 0x57f   : > { %3745 = vmatpush1.bf16.msra.mxu0 %v5035_v21  ;;  %3776 = vmatprep.mubr.bf16.mxu0 %v5384_v7  ;;  %v5086_v21 = vld [vmem:[%s5804_s14 + $0x30] sm:$0xff]   ;;  %v3531_v7 = vsub.s32 2, %v5920_v57 }
 0x580   : > { %3746 = vmatprep.subr.bf16.mxu0 %v5043_v34  ;;  %v5099_v34 = vld [vmem:[%s5804_s14 + $0x98] sm:$0xff]  }
 0x581   : > { %v3532_v59 = vrot.slane %v3519_v0, %v3531_v7 }
 0x583   : > { %3747 = vmatpush1.bf16.msra.mxu0 %v5041_v33  ;;  %v5098_v33 = vld [vmem:[%s5804_s14 + $0x18] sm:$0xff]  }
 0x584   : > { %3748 = vmatprep.subr.bf16.mxu0 %v5049_v50  ;;  %v5103_v50 = vld [vmem:[%s5804_s14 + $0x90] sm:$0xff]  }
 0x587   : > { %3749 = vmatpush1.bf16.msra.mxu0 %v5047_v48  ;;  %v5102_v48 = vld [vmem:[%s5804_s14 + $0x10] sm:$0xff]  }
 0x588   : > { %3750 = vmatprep.subr.bf16.mxu0 %v5055_v53  ;;  %v5105_v53 = vld [vmem:[%s5804_s14 + $0xc8] sm:$0xff]  }
 0x58b   : > { %3751 = vmatpush1.bf16.msra.mxu0 %v5053_v60  ;;  %v5107_v60 = vld [vmem:[%s5804_s14 + $0x88] sm:$0xff]  }
 0x58c   : > { %3752 = vmatprep.subr.bf16.mxu0 %v5061_v62  ;;  %v5109_v62 = vld [vmem:[%s5804_s14 + $0xc0] sm:$0xff]  }
 0x58f   : > { %3753 = vmatpush1.bf16.msra.mxu0 %v5059_v2  ;;  %v5111_v2 = vld [vmem:[%s5804_s14 + $0x80] sm:$0xff]  }
 0x590   : > { %3754 = vmatprep.subr.bf16.mxu0 %v5067_v6  ;;  %v3535_v6 = vsub.s32 3, %v5920_v57 }
 0x592   : > { %v3536_v55 = vrot.slane %v3519_v0, %v3535_v6 }
 0x593   : > { %3755 = vmatpush1.bf16.msra.mxu0 %v5065_v3 }
 0x594   : > { %3756 = vmatprep.subr.bf16.mxu0 %v5073_v15  ;;  %v3528_v15 = vrot.slane %v3519_v0, %v3527_v4 }
 0x597   : > { %3757 = vmatpush1.bf16.msra.mxu0 %v5071_v56  ;;  %v3524_v56 = vrot.slane %v3519_v0, %v6083_v1 }
 0x598   : > { %3758 = vmatprep.subr.bf16.mxu0 %v5079_v46 }
 0x59b   : > { %3759 = vmatpush1.bf16.msra.mxu0 %v5077_v5 }
 0x59c   : > { %4705 = vmatprep.subr.bf16.mxu0 %v5081_v58 }
 0x63e   : > { %v3436_v43 = vpop.f32.mrf.mxu0 }
 0x63f   : > { %v3437_v44 = vadd.f32 %v4527_v38, %v3436_v43 }
 0x640   : > { %v4901_v52 = vpop.f32.mrf.mxu0 }
 0x641   : > { %v3443_v42 = vadd.f32 %v5152_v13, %v3437_v44  ;;  %v4537_v13 = vld [vmem:[%s885_s27] ss:$0 sm:$0xff] }
 0x642   : > { %v3439_v14 = vpop.f32.mrf.mxu0 }
 0x643   : > { %v3440_v41 = vadd.f32 %v4527_v38, %v3439_v14  ;;  %3447 = vadd.xlane.f32.xlu1 %v3443_v42  ;;  %v4536_v38 = vld [vmem:[%s6504_s19] ss:$0 sm:$0xff] }
 0x644   : > { %v4902_v16 = vpop.f32.mrf.mxu0 }
 0x645   : > { %v3444_v18 = vadd.f32 %v5153_v17, %v3440_v41  ;;  %v5082_v16 = vld [vmem:[%s5804_s14 + $0x38] sm:$0xff]  }
 0x646   : > { %v5083_v17 = vld [vmem:[%s5804_s14 + $0xb8] sm:$0xff]  }
 0x647   : > { %3449 = vadd.xlane.f32.xlu0 %v3444_v18 }
 0x6cc   : > { %v3448_v24 = vpop.xlane.xlu1 %3447 }
 0x6cd   : > { %v3452_v23 = vmul.f32 0.0078125, %v3448_v24  ;;  %v5088_v24 = vld [vmem:[%s5804_s14 + $0x68] sm:$0xff]  }
 0x6cf   : > { %v6282_v25 = vsub.f32 %v3443_v42, %v3452_v23  ;;  %v5089_v23 = vld [vmem:[%s5804_s14 + $0xe8] sm:$0xff]  }
 0x6d0   : > { %v3450_v26 = vpop.xlane.xlu0 %3449 }
 0x6d1   : > { %v3453_v27 = vmul.f32 0.0078125, %v3450_v26  ;;  %v3456_v28 = vmul.f32 %v6282_v25, %v6282_v25  ;;  %v5091_v26 = vld [vmem:[%s5804_s14 + $0xa8] sm:$0xff]  }
 0x6d3   : > { %v6286_v29 = vsub.f32 %v3444_v18, %v3453_v27  ;;  %3458 = vadd.xlane.f32.xlu0 %v3456_v28  ;;  %v5092_v27 = vld [vmem:[%s5804_s14 + $0x60] sm:$0xff]  }
 0x6d4   : > { %v5093_v28 = vld [vmem:[%s5804_s14 + $0xe0] sm:$0xff]  }
 0x6d5   : > { %v3457_v30 = vmul.f32 %v6286_v29, %v6286_v29 }
 0x6d7   : > { %3460 = vadd.xlane.f32.xlu1 %v3457_v30  ;;  %v5095_v30 = vld [vmem:[%s5804_s14 + $0xa0] sm:$0xff]  }
 0x75c   : > { %v3459_v36 = vpop.xlane.xlu0 %3458 }
 0x75d   : > { %v3462_v37 = vmul.f32 0.0078125, %v3459_v36 }
 0x75f   : > { %v3464_v47 = vadd.f32 1e-05, %v3462_v37 }
 0x760   : > { %v3461_v40 = vpop.xlane.xlu1 %3460 }
 0x761   : > { %5144 = vrsqrt.f32 %v3464_v47  ;;  %v3463_v9 = vmul.f32 0.0078125, %v3461_v40 }
 0x763   : > { %v3465_v10 = vadd.f32 1e-05, %v3463_v9 }
 0x765   : > { %5146 = vrsqrt.f32 %v3465_v10 }
 0x76e   : > { %v5145_v11 = vpop.eup %5144 }
 0x76f   : > { %v3468_v12 = vmul.f32 %v5145_v11, %v6282_v25  ;;  %v5090_v25 = vld [vmem:[%s5804_s14 + $0x28] sm:$0xff]  }
 0x771   : > { %v3476_v52 = vmul.f32 %v4536_v38, %v3468_v12 }
 0x772   : > { %v5147_v43 = vpop.eup %5146 }
 0x773   : > { %v3469_v44 = vmul.f32 %v5147_v43, %v6286_v29  ;;  %v6332_v14 = vadd.f32 %v4537_v13, %v3476_v52  ;;  %v5094_v29 = vld [vmem:[%s5804_s14 + $0x20] sm:$0xff]  }
 0x775   : > { %v3477_v42 = vmul.f32 %v4536_v38, %v3469_v44 }
 0x777   : > { %v6334_v41 = vadd.f32 %v4537_v13, %v3477_v42 }
 0x779   : > { %v3486_v18 = vpack.c.bf16 %v6334_v41, %v6332_v14 }
 0x77b   : > { %3734 = vmatmul.mubr.bf16.vlgmr.msra.gmra.mxu1 %v3486_v18  ;;  %3777 = vmatmul.mubr.bf16.vlgmr.msra.gmra.mxu0 %v3486_v18 }
 0x77c   : > { %4684 = vmatpush3.bf16.msra.mxu1 %v5082_v16  ;;  %4706 = vmatpush3.bf16.msra.mxu0 %v5083_v17 }
 0x77d   : > { %4685 = vmatprep.subr.bf16.mxu1 %v5084_v19  ;;  %4707 = vmatprep.subr.bf16.mxu0 %v5085_v20 }
 0x780   : > { %4686 = vmatpush3.bf16.msra.mxu1 %v5086_v21  ;;  %4708 = vmatpush3.bf16.msra.mxu0 %v5087_v22 }
 0x781   : > { %4687 = vmatprep.subr.bf16.mxu1 %v5088_v24  ;;  %4709 = vmatprep.subr.bf16.mxu0 %v5089_v23  ;;  %v4570_v24 = vld [vmem:[%s892_s12] ss:$0 sm:$0xff] }
 0x784   : > { %4688 = vmatpush3.bf16.msra.mxu1 %v5090_v25  ;;  %4710 = vmatpush3.bf16.msra.mxu0 %v5091_v26 }
 0x785   : > { %4689 = vmatprep.subr.bf16.mxu1 %v5092_v27  ;;  %4711 = vmatprep.subr.bf16.mxu0 %v5093_v28 }
 0x788   : > { %4690 = vmatpush3.bf16.msra.mxu1 %v5094_v29  ;;  %4712 = vmatpush3.bf16.msra.mxu0 %v5095_v30 }
 0x789   : > { %4691 = vmatprep.subr.bf16.mxu1 %v5096_v31  ;;  %4713 = vmatprep.subr.bf16.mxu0 %v5097_v32 }
 0x78c   : > { %4692 = vmatpush3.bf16.msra.mxu1 %v5098_v33  ;;  %4714 = vmatpush3.bf16.msra.mxu0 %v5099_v34 }
 0x78d   : > { %4693 = vmatprep.subr.bf16.mxu1 %v5100_v35  ;;  %4715 = vmatprep.subr.bf16.mxu0 %v5101_v49 }
 0x790   : > { %4694 = vmatpush3.bf16.msra.mxu1 %v5102_v48  ;;  %4716 = vmatpush3.bf16.msra.mxu0 %v5103_v50 }
 0x791   : > { %4695 = vmatprep.subr.bf16.mxu1 %v5104_v51  ;;  %4717 = vmatprep.subr.bf16.mxu0 %v5105_v53 }
 0x794   : > { %4696 = vmatpush3.bf16.msra.mxu1 %v5106_v54  ;;  %4718 = vmatpush3.bf16.msra.mxu0 %v5107_v60 }
 0x795   : > { %4697 = vmatprep.subr.bf16.mxu1 %v5108_v61  ;;  %4719 = vmatprep.subr.bf16.mxu0 %v5109_v62 }
 0x798   : > { %4698 = vmatpush3.bf16.msra.mxu1 %v5110_v63  ;;  %4720 = vmatpush3.bf16.msra.mxu0 %v5111_v2 }
 0x83b   : > { %v3735_v3 = vpop.f32.mrf.mxu1  ;;  %v3778_v8 = vpop.f32.mrf.mxu0 }
 0x83c   : > { %v3736_v40 = vadd.f32 %v3735_v3, %v3524_v56  ;;  %v3779_v9 = vadd.f32 %v3778_v8, %v3532_v59 }
 0x83d   : > { %v3737_v46 = vpop.f32.mrf.mxu1  ;;  %v3780_v39 = vpop.f32.mrf.mxu0 }
 0x83e   : > { %v3738_v58 = vadd.f32 %v3737_v46, %v3528_v15  ;;  %v3781_v36 = vadd.f32 %v3780_v39, %v3536_v55  ;;  %v3787_v42 = vmax.f32 %v3736_v40, 0.0  ;;  %v3789_v16 = vmax.f32 %v3779_v9, 0.0 }
 0x83f   : > { %v3739_v5 = vpop.f32.mrf.mxu1  ;;  %v3782_v45 = vpop.f32.mrf.mxu0 }
 0x840   : > { %v3740_v37 = vadd.f32 %v3739_v5, %v3524_v56  ;;  %v3783_v47 = vadd.f32 %v3782_v45, %v3532_v59  ;;  %v3788_v44 = vmax.f32 %v3738_v58, 0.0  ;;  %v3790_v1 = vmax.f32 %v3781_v36, 0.0  ;;  %v4604_v56 = vld [vmem:[%s898_s9] ss:$0 sm:$0xff] }
 0x841   : > { %v3741_v10 = vpop.f32.mrf.mxu1  ;;  %v3784_v57 = vpop.f32.mrf.mxu0 }
 0x842   : > { %v3742_v11 = vadd.f32 %v3741_v10, %v3528_v15  ;;  %v3785_v12 = vadd.f32 %v3784_v57, %v3536_v55  ;;  %v3791_v38 = vmax.f32 %v3740_v37, 0.0  ;;  %v3793_v43 = vmax.f32 %v3783_v47, 0.0  ;;  %v4603_v15 = vld [vmem:[%s895_s3] ss:$0 sm:$0xff]  ;;  %s5294_s3 = scalar_lea.vmem %s4197_s15, 256 }
 0x843   : > { %p5295_p9 = scmp.ne.s32.totalorder %s4197_s15, %s5294_s3  ;;  %p5302_p2 = scmp.lt.s32.totalorder %s5294_s3, %s5294_s3 }
 0x844   : > { %v3792_v52 = vmax.f32 %v3742_v11, 0.0  ;;  %v3794_v13 = vmax.f32 %v3785_v12, 0.0  ;;  %v3795_v19 = vpack.c.bf16 %v3791_v38, %v3787_v42  ;;  %v3797_v20 = vpack.c.bf16 %v3793_v43, %v3789_v16 }
 0x845   : > { %p5296_p0 = pnand %p5295_p9, %p4934_p7  ;;  %p5303_p3 = por %p5302_p2, %p5301_p10 }
 0x846   : > { %v3796_v17 = vpack.c.bf16 %v3792_v52, %v3788_v44  ;;  %v3798_v18 = vpack.c.bf16 %v3794_v13, %v3790_v1 }
 0x847   : > { %p5297_p1 = pneg %p5296_p0 }
 0x848   : > { %4094 = vmatprep.mubr.bf16.mxu1 %v3796_v17  ;;  %4135 = vmatprep.mubr.bf16.mxu0 %v3798_v18 }
 0x849   : > { %4095 = vmatmul.mubr.bf16.vlgmr.msra.gmra.mxu1 %v3795_v19  ;;  %4136 = vmatmul.mubr.bf16.vlgmr.msra.gmra.mxu0 %v3797_v20  ;;  %p5304_p4 = pnand %p5303_p3, %p5297_p1 }
 0x909   : > { %v4699_v21 = vpop.f32.mrf.mxu1  ;;  %v4721_v22 = vpop.f32.mrf.mxu0 }
 0x90b   : > { %v4700_v23 = vpop.f32.mrf.mxu1  ;;  %v4722_v25 = vpop.f32.mrf.mxu0 }
 0x90c   : > { %v4701_v26 = vadd.f32 %v4700_v23, %v4699_v21  ;;  %v4723_v30 = vadd.f32 %v4722_v25, %v4721_v22 }
 0x90d   : > { %v4702_v27 = vpop.f32.mrf.mxu1  ;;  %v4724_v28 = vpop.f32.mrf.mxu0 }
 0x90e   : > { %v4097_v29 = vadd.f32 %v4701_v26, %v4570_v24 }
 0x90f   : > { %v4703_v31 = vpop.f32.mrf.mxu1  ;;  %v4725_v32 = vpop.f32.mrf.mxu0 }
 0x910   : > { %v4138_v33 = vadd.f32 %v4723_v30, %v4097_v29  ;;  %v4704_v34 = vadd.f32 %v4703_v31, %v4702_v27  ;;  %v4726_v49 = vadd.f32 %v4725_v32, %v4724_v28 }
 0x912   : > { %v4100_v35 = vadd.f32 %v4704_v34, %v4570_v24  ;;  %v4144_v48 = vadd.f32 %v4138_v33, %v6332_v14 }
 0x914   : > { %v4141_v50 = vadd.f32 %v4726_v49, %v4100_v35  ;;  %4148 = vadd.xlane.f32.xlu0 %v4144_v48 }
 0x916   : > { %v4145_v51 = vadd.f32 %v4141_v50, %v6334_v41 }
 0x918   : > { %4150 = vadd.xlane.f32.xlu1 %v4145_v51 }
 0x99d   : > { %v4149_v53 = vpop.xlane.xlu0 %4148 }
 0x99e   : > { %v4152_v54 = vmul.f32 0.0078125, %v4149_v53 }
 0x9a0   : > { %v4154_v60 = vsub.f32 %v4144_v48, %v4152_v54 }
 0x9a1   : > { %v4151_v61 = vpop.xlane.xlu1 %4150 }
 0x9a2   : > { %v4153_v62 = vmul.f32 0.0078125, %v4151_v61  ;;  %v4156_v63 = vmul.f32 %v4154_v60, %v4154_v60 }
 0x9a4   : > { %v4155_v2 = vsub.f32 %v4145_v51, %v4153_v62  ;;  %4158 = vadd.xlane.f32.xlu0 %v4156_v63 }
 0x9a6   : > { %v4157_v4 = vmul.f32 %v4155_v2, %v4155_v2 }
 0x9a8   : > { %4160 = vadd.xlane.f32.xlu1 %v4157_v4 }
 0xa2d   : > { %v4159_v6 = vpop.xlane.xlu0 %4158 }
 0xa2e   : > { %v4162_v7 = vmul.f32 0.0078125, %v4159_v6 }
 0xa30   : > { %v4164_v14 = vadd.f32 1e-05, %v4162_v7 }
 0xa31   : > { %v4161_v0 = vpop.xlane.xlu1 %4160 }
 0xa32   : > { %5148 = vrsqrt.f32 %v4164_v14  ;;  %v4163_v3 = vmul.f32 0.0078125, %v4161_v0 }
 0xa34   : > { %v4165_v41 = vadd.f32 1e-05, %v4163_v3 }
 0xa36   : > { %5150 = vrsqrt.f32 %v4165_v41 }
 0xa3f   : > { %v5149_v8 = vpop.eup %5148 }
 0xa40   : > { %v4168_v55 = vmul.f32 %v5149_v8, %v4154_v60 }
 0xa42   : > { %v4176_v59 = vmul.f32 %v4603_v15, %v4168_v55 }
 0xa43   : > { %v5151_v46 = vpop.eup %5150 }
 0xa44   : > { %v4169_v39 = vmul.f32 %v5151_v46, %v4155_v2  ;;  %v4184_v5 = vadd.f32 %v4604_v56, %v4176_v59 }
 0xa46   : > { %v4177_v45 = vmul.f32 %v4603_v15, %v4169_v39  ;;  %4186 = vst [vmem:[#allocation2] sm:$0xff] %v4184_v5  ;;  %4188 = vst [vmem:[#allocation12] sm:$0xff] %v4184_v5 }
 0xa48   : > { %v4185_v58 = vadd.f32 %v4604_v56, %v4177_v45 }
 0xa4a   : > { %4187 = vst [vmem:[#allocation2 + $0x8] sm:$0xff] %v4185_v58  ;;  %4189 = vst [vmem:[#allocation12 + $0x8] sm:$0xff] %v4185_v58 }
 0xa4b   : > { %5307 = shalt.err (!%p5304_p4)
}
 0xa4c   : > { %s5386_s11 = smov 128   ;;  %s5387_s9 = smov 8  }
 0xa4d   : > { %s6509_s28 = sld [smem:[#allocation38_spill]] }
 0xa53   : > { %4914 = dma.vmem_to_hbm [thread:$0]  (%p4934_p7), %s4197_s15, 256, %s6509_s28, [#allocation5], %s5386_s11, %s5386_s11, %s5387_s9  }
 0xa54   : > { %5347 = dma.done.wait (%p4934_p7), [#allocation5], 256  }
 0xa55   : > { %5349 = vsyncadd (%p4934_p7), [#allocation5], 4294967040 }
 0xa56 PF: > { %s6510_s30 = sld [smem:[#allocation19_spill]] }
 0xa57   : > { %s6511_s27 = sld [smem:[#allocation17_spill]] }
 0xa58   : > { %s6512_s28 = sld [smem:[#allocation18_spill]] }
 0xa59   : > { %s6513_s29 = sld [smem:[#allocation20_spill]] }
 0xa5c   : > { %p35_p5 = scmp.ge.s32.totalorder %s6510_s30, 4  }
 0xa5e   :  { %37 = sbr.rel (!%p35_p5) target bundleno = 26 (0x1a), region = 214 }
 0xa63   :  { %4212 = vsyncpa [#allocation4], 1 }
 0xa64   :  { %4214 = vsyncpa [#allocation4 + $0x1], 1 }
 0xa65   :  { %4215 = vsyncpa [#allocation7], 1 }
 0xa66   :  { %4217 = vsyncpa [#allocation7 + $0x1], 1 }
 0xa67   :  { %4218 = vsyncpa [#allocation10], 1 }
 0xa68   :  { %4220 = vsyncpa [#allocation10 + $0x1], 1 }
 0xa69   :  { %4221 = vsyncpa [#allocation5], 1 }
 0xa6a   :  { %4223 = vsyncpa [#allocation5 + $0x1], 1 }

</bundles_post_ra>
